<compile_context>
chip_gen: v7x
topology: tpu7x:2x2x1
jax: 0.10.0
libtpu: 0.0.40
codegen_flags: <defaults>
</compile_context>

<pallas_src>
import math
from functools import partial

import jax
import jax.numpy as jnp
import numpy as np
from jax import lax
from jax.experimental import pallas as pl
from jax.experimental.pallas import tpu as pltpu

D_MODEL = 64
N_HEADS = 4
HEAD_DIM = D_MODEL // N_HEADS
D_FF = 256
N_LAYERS = 2
N_CLASSES = 2
EPS = 1e-5  # PyTorch LayerNorm default eps

# ---- packed weight-slab column offsets (per layer: 64 rows x 512 cols, bf16) ----
_QKV_OFF = 0                       # (64, 192)  Wq|Wk|Wv (Wq pre-scaled by 1/sqrt(HEAD_DIM))
_WO_OFF = 3 * D_MODEL              # (64, 64)
_FF1_OFF = _WO_OFF + D_MODEL       # (64, 256)
_SLAB_COLS = _FF1_OFF + D_FF       # 512

# ---- misc buffer (f32, width 256 lanes) row layout ----
_MISC_COLS = D_FF                  # 256
_ROWS_PER_LAYER = 8
_R_BQKV, _R_BO, _R_G1, _R_BE1, _R_BFF1, _R_BFF2, _R_G2, _R_BE2 = range(_ROWS_PER_LAYER)


def _misc_layout(input_dim):
    r_wproj = 0
    r_bproj = r_wproj + input_dim
    r_layer0 = r_bproj + 1
    r_wout = r_layer0 + N_LAYERS * _ROWS_PER_LAYER
    r_bout = r_wout + N_CLASSES
    n_rows = r_bout + 1
    return r_wproj, r_bproj, r_layer0, r_wout, r_bout, n_rows


def _layer_norm(x, gamma, beta):
    mean = jnp.mean(x, axis=-1, keepdims=True)
    var = jnp.mean((x - mean) ** 2, axis=-1, keepdims=True)  # biased, like PyTorch
    return (x - mean) * lax.rsqrt(var + EPS) * gamma + beta


def transformer_kernel(x_ref, wslab_ref, ff2_ref, misc_ref, out_ref, *, input_dim):
    """Whole problem fits in VMEM: S = dim0 sequence length, single batch column."""
    r_wproj, r_bproj, r_layer0, _r_wout, _r_bout, _ = _misc_layout(input_dim)

    x = x_ref[...].astype(jnp.float32)                    # (S, input_dim)
    S = x.shape[0]

    # --- input projection: tiny input_dim -> VPU broadcast multiply-adds, bias as init.
    #     (If input_dim ever grows beyond ~8, replace with one padded bf16 MXU matmul.)
    h = (misc_ref[r_bproj:r_bproj + 1, 0:D_MODEL]
         + x[:, 0:1] * misc_ref[r_wproj:r_wproj + 1, 0:D_MODEL])
    for k in range(1, input_dim):
        h = h + x[:, k:k + 1] * misc_ref[r_wproj + k:r_wproj + k + 1, 0:D_MODEL]

    for l in range(N_LAYERS):                             # static unroll (N_LAYERS = 2)
        base = r_layer0 + l * _ROWS_PER_LAYER
        h16 = h.astype(jnp.bfloat16)

        # --- fused Q|K|V projection: one bf16 MXU matmul per layer
        #     (attention 1/sqrt(HEAD_DIM) is already folded into the Q columns & bq)
        qkv = jnp.dot(h16, wslab_ref[l, :, _QKV_OFF:_QKV_OFF + 3 * D_MODEL],
                      preferred_element_type=jnp.float32)
        qkv = qkv + misc_ref[base + _R_BQKV:base + _R_BQKV + 1, 0:3 * D_MODEL]
        qkv16 = qkv.astype(jnp.bfloat16)

        wo_l = wslab_ref[l, :, _WO_OFF:_WO_OFF + D_MODEL]  # (64, 64) bf16, loaded once

        # --- multi-head attention; heads folded into the Wo accumulation (no concat)
        attn = jnp.zeros((S, D_MODEL), jnp.float32)
        for hd in range(N_HEADS):                          # static unroll (4 heads)
            lo = hd * HEAD_DIM
            qh = qkv16[:, lo:lo + HEAD_DIM]
            kh = qkv16[:, D_MODEL + lo:D_MODEL + lo + HEAD_DIM]
            vh = qkv16[:, 2 * D_MODEL + lo:2 * D_MODEL + lo + HEAD_DIM]
            # NT matmul (contract last dims) -> no explicit kh transpose (no XLU relayout)
            s = lax.dot_general(qh, kh, (((1,), (1,)), ((), ())),
                                preferred_element_type=jnp.float32)
            s = s - jnp.max(s, axis=-1, keepdims=True)
            p = jnp.exp(s)
            p = p * pl.reciprocal(jnp.sum(p, axis=-1, keepdims=True), approx=True)
            oh = jnp.dot(p.astype(jnp.bfloat16), vh,
                         preferred_element_type=jnp.float32)               # (S, HEAD_DIM)
            attn = attn + jnp.dot(oh.astype(jnp.bfloat16), wo_l[lo:lo + HEAD_DIM, :],
                                  preferred_element_type=jnp.float32)
        attn = attn + misc_ref[base + _R_BO:base + _R_BO + 1, 0:D_MODEL]

        # post-norm (norm_first=False): norm1(x + attn)   [f32]
        h = _layer_norm(h + attn,
                        misc_ref[base + _R_G1:base + _R_G1 + 1, 0:D_MODEL],
                        misc_ref[base + _R_BE1:base + _R_BE1 + 1, 0:D_MODEL])

        # --- feed-forward: linear2(relu(linear1(x))), then norm2(x + ff)
        ff = jnp.dot(h.astype(jnp.bfloat16), wslab_ref[l, :, _FF1_OFF:_FF1_OFF + D_FF],
                     preferred_element_type=jnp.float32)
        ff = ff + misc_ref[base + _R_BFF1:base + _R_BFF1 + 1, 0:D_FF]
        ff = jnp.maximum(ff, 0.0)
        ff = jnp.dot(ff.astype(jnp.bfloat16), ff2_ref[l],
                     preferred_element_type=jnp.float32)
        ff = ff + misc_ref[base + _R_BFF2:base + _R_BFF2 + 1, 0:D_MODEL]
        h = _layer_norm(h + ff,
                        misc_ref[base + _R_G2:base + _R_G2 + 1, 0:D_MODEL],
                        misc_ref[base + _R_BE2:base + _R_BE2 + 1, 0:D_MODEL])

    # --- fused classifier head; w_out stored transposed -> NT dot (no in-kernel transpose).
    #     Kept in f32: tiny matmul, best final-logit accuracy.
    wout_t = misc_ref[_r_wout:_r_wout + N_CLASSES, 0:D_MODEL]               # (2, 64)
    logits = lax.dot_general(h, wout_t, (((1,), (1,)), ((), ())),
                             preferred_element_type=jnp.float32)
    out_ref[...] = (logits
                    + misc_ref[_r_bout:_r_bout + 1, 0:N_CLASSES]).astype(out_ref.dtype)


def prepare_params(params, input_dim):
    """ONE-TIME packing (hoisted out of the forward path, per perf review):
    QKV concat, attention-scale folding, bf16 weight slabs, f32 misc slab."""
    scale = 1.0 / math.sqrt(HEAD_DIM)
    wqkv = jnp.concatenate([params["wq"] * scale, params["wk"], params["wv"]],
                           axis=-1)                                      # (L, 64, 192)
    bqkv = np.concatenate([np.asarray(params["bq"]) * scale,
                           np.asarray(params["bk"]),
                           np.asarray(params["bv"])], axis=-1)           # (L, 1, 192)

    # bf16 weight slab A: [Wqkv | Wo | Wff1] along lanes
    wslab = jnp.concatenate([wqkv, params["wo"], params["w_ff1"]],
                            axis=-1).astype(jnp.bfloat16)                # (L, 64, 512)
    assert wslab.shape[-1] == _SLAB_COLS
    # bf16 weight slab B: Wff2 in natural NN layout
    ff2 = params["w_ff2"].astype(jnp.bfloat16)                           # (L, 256, 64)

    r_wproj, r_bproj, r_layer0, r_wout, r_bout, n_rows = _misc_layout(input_dim)
    misc = np.zeros((n_rows, _MISC_COLS), np.float32)
    misc[r_wproj:r_wproj + input_dim, :D_MODEL] = np.asarray(params["w_proj"])
    misc[r_bproj, :D_MODEL] = np.asarray(params["b_proj"])[0]
    for l in range(N_LAYERS):
        base = r_layer0 + l * _ROWS_PER_LAYER
        misc[base + _R_BQKV, :3 * D_MODEL] = bqkv[l, 0]
        misc[base + _R_BO, :D_MODEL] = np.asarray(params["bo"])[l, 0]
        misc[base + _R_G1, :D_MODEL] = np.asarray(params["ln1_g"])[l, 0]
        misc[base + _R_BE1, :D_MODEL] = np.asarray(params["ln1_b"])[l, 0]
        misc[base + _R_BFF1, :D_FF] = np.asarray(params["b_ff1"])[l, 0]
        misc[base + _R_BFF2, :D_MODEL] = np.asarray(params["b_ff2"])[l, 0]
        misc[base + _R_G2, :D_MODEL] = np.asarray(params["ln2_g"])[l, 0]
        misc[base + _R_BE2, :D_MODEL] = np.asarray(params["ln2_b"])[l, 0]
    misc[r_wout:r_wout + N_CLASSES, :D_MODEL] = np.asarray(params["w_out"]).T
    misc[r_bout, :N_CLASSES] = np.asarray(params["b_out"])[0]

    return {"wslab": wslab, "ff2": ff2, "misc": jnp.asarray(misc), "input_dim": input_dim}


def time_series_transformer(x, packed):
    """x: (dim0, dim1, input_dim) float32 -> (dim0, n_classes) float32.

    Only the last dim1 column is consumed by x[:, -1, :] downstream (columns are
    independent through the encoder: batch_first=False, no mask) -> slice up front.
    """
    D0 = x.shape[0]
    x_last = x[:, -1, :]                                  # (D0, input_dim)
    kernel = partial(transformer_kernel, input_dim=packed["input_dim"])

    # No grid: whole (tiny) problem lives in VMEM, 4 operand DMAs, single invocation.
    return pl.pallas_call(
        kernel,
        out_shape=jax.ShapeDtypeStruct((D0, N_CLASSES), jnp.float32),
        compiler_params=pltpu.CompilerParams(vmem_limit_bytes=32 * 1024 * 1024),
    )(x_last, packed["wslab"], packed["ff2"], packed["misc"])


def init_params(key, input_dim):
    ks = iter(jax.random.split(key, 24))

    def nrm(shape, scale):
        return jax.random.normal(next(ks), shape, jnp.float32) * scale

    L, D, F = N_LAYERS, D_MODEL, D_FF
    return {
        "w_proj": nrm((input_dim, D), 0.3),
        "b_proj": nrm((1, D), 0.05),
        "wq": nrm((L, D, D), 0.08), "bq": nrm((L, 1, D), 0.02),
        "wk": nrm((L, D, D), 0.08), "bk": nrm((L, 1, D), 0.02),
        "wv": nrm((L, D, D), 0.08), "bv": nrm((L, 1, D), 0.02),
        "wo": nrm((L, D, D), 0.08), "bo": nrm((L, 1, D), 0.02),
        "ln1_g": jnp.ones((L, 1, D), jnp.float32),
        "ln1_b": jnp.zeros((L, 1, D), jnp.float32),
        "w_ff1": nrm((L, D, F), 0.08), "b_ff1": nrm((L, 1, F), 0.02),
        "w_ff2": nrm((L, F, D), 0.08), "b_ff2": nrm((L, 1, D), 0.02),
        "ln2_g": jnp.ones((L, 1, D), jnp.float32),
        "ln2_b": jnp.zeros((L, 1, D), jnp.float32),
        "w_out": nrm((D, N_CLASSES), 0.1),
        "b_out": nrm((1, N_CLASSES), 0.02),
    }


def reference_forward(x, p):
    """Pure-JAX f32 reference mirroring PyTorch eval-mode semantics over the FULL input."""
    h = jnp.einsum("abi,id->abd", x, p["w_proj"]) + p["b_proj"][0]
    scale = 1.0 / math.sqrt(HEAD_DIM)
    for l in range(N_LAYERS):
        q = jnp.einsum("abd,de->abe", h, p["wq"][l]) + p["bq"][l, 0]
        k = jnp.einsum("abd,de->abe", h, p["wk"][l]) + p["bk"][l, 0]
        v = jnp.einsum("abd,de->abe", h, p["wv"][l]) + p["bv"][l, 0]
        A, B = h.shape[0], h.shape[1]
        qh = q.reshape(A, B, N_HEADS, HEAD_DIM)
        kh = k.reshape(A, B, N_HEADS, HEAD_DIM)
        vh = v.reshape(A, B, N_HEADS, HEAD_DIM)
        s = jnp.einsum("abhd,cbhd->bhac", qh, kh) * scale
        pr = jax.nn.softmax(s, axis=-1)
        o = jnp.einsum("bhac,cbhd->abhd", pr, vh).reshape(A, B, D_MODEL)
        attn = jnp.einsum("abd,de->abe", o, p["wo"][l]) + p["bo"][l, 0]
        h = _layer_norm(h + attn, p["ln1_g"][l, 0], p["ln1_b"][l, 0])
        ff = jax.nn.relu(jnp.einsum("abd,df->abf", h, p["w_ff1"][l]) + p["b_ff1"][l, 0])
        ff = jnp.einsum("abf,fd->abd", ff, p["w_ff2"][l]) + p["b_ff2"][l, 0]
        h = _layer_norm(h + ff, p["ln2_g"][l, 0], p["ln2_b"][l, 0])
    last = h[:, -1, :]
    return jnp.dot(last, p["w_out"]) + p["b_out"][0]


if __name__ == "__main__":
    key = jax.random.PRNGKey(0)
    k_x, k_p = jax.random.split(key)

    # small shapes consistent with the module: x as it is passed to forward()
    D0, D1, INPUT_DIM = 8, 2, 1
    x = jax.random.normal(k_x, (D0, D1, INPUT_DIM), jnp.float32)
    params = init_params(k_p, INPUT_DIM)

    # One-time param prep (hoisted out of the per-call path per perf review).
    packed = prepare_params(params, INPUT_DIM)

    out = jax.block_until_ready(time_series_transformer(x, packed))
    ref = reference_forward(x, params)

    assert out.shape == (D0, N_CLASSES), out.shape
    # bf16 MXU operands (per perf review) vs. the pure-f32 reference: typical deviation
    # is ~1e-2 on O(1) logits, so tolerance is set accordingly.
    err = np.max(np.abs(np.asarray(out) - np.asarray(ref)))
    assert np.allclose(np.asarray(out), np.asarray(ref), rtol=5e-2, atol=5e-2), err

    print("KERNEL_OK")
</pallas_src>

<mosaic_0001>
module attributes {stable_mosaic.version = 11 : i64} {
  func.func @transformer_kernel(%arg0: memref<8x1xf32, #tpu.memory_space<vmem>>, %arg1: memref<2x64x512xbf16, #tpu.memory_space<vmem>>, %arg2: memref<2x256x64xbf16, #tpu.memory_space<vmem>>, %arg3: memref<21x256xf32, #tpu.memory_space<vmem>>, %arg4: memref<8x2xf32, #tpu.memory_space<vmem>>) attributes {dimension_semantics = [], scalar_prefetch = 0 : i64, scratch_operands = 0 : i64, tpu.core_type = #tpu.core_type<tc>} {
    %c0 = arith.constant 0 : index
    %c0_0 = arith.constant 0 : index
    %0 = vector.load %arg0[%c0, %c0_0] : memref<8x1xf32, #tpu.memory_space<vmem>>, vector<8x1xf32>
    %c1 = arith.constant 1 : index
    %c0_1 = arith.constant 0 : index
    %1 = vector.load %arg3[%c1, %c0_1] : memref<21x256xf32, #tpu.memory_space<vmem>>, vector<1x64xf32>
    %c0_2 = arith.constant 0 : index
    %c0_3 = arith.constant 0 : index
    %2 = vector.load %arg3[%c0_2, %c0_3] : memref<21x256xf32, #tpu.memory_space<vmem>>, vector<1x64xf32>
    %3 = vector.broadcast %0 : vector<8x1xf32> to vector<8x64xf32>
    %4 = vector.broadcast %2 : vector<1x64xf32> to vector<8x64xf32>
    %5 = arith.mulf %3, %4 : vector<8x64xf32>
    %6 = vector.broadcast %1 : vector<1x64xf32> to vector<8x64xf32>
    %7 = arith.addf %6, %5 : vector<8x64xf32>
    %8 = arith.truncf %7 : vector<8x64xf32> to vector<8x64xbf16>
    %c0_4 = arith.constant 0 : index
    %c0_5 = arith.constant 0 : index
    %c0_6 = arith.constant 0 : index
    %9 = vector.load %arg1[%c0_4, %c0_5, %c0_6] : memref<2x64x512xbf16, #tpu.memory_space<vmem>>, vector<1x64x192xbf16>
    %10 = vector.shape_cast %9 : vector<1x64x192xbf16> to vector<64x192xbf16>
    %cst = arith.constant dense<0.000000e+00> : vector<8x192xf32>
    %11 = tpu.matmul %8, %10, %cst {dimension_numbers = #tpu.dot_dimension_numbers<[1], [0], [0], [1], [0, 0, 1, 1], [], []>} : vector<8x64xbf16>, vector<64x192xbf16>, vector<8x192xf32> -> vector<8x192xf32>
    %c2 = arith.constant 2 : index
    %c0_7 = arith.constant 0 : index
    %12 = vector.load %arg3[%c2, %c0_7] : memref<21x256xf32, #tpu.memory_space<vmem>>, vector<1x192xf32>
    %13 = vector.broadcast %12 : vector<1x192xf32> to vector<8x192xf32>
    %14 = arith.addf %11, %13 : vector<8x192xf32>
    %15 = arith.truncf %14 : vector<8x192xf32> to vector<8x192xbf16>
    %c0_8 = arith.constant 0 : index
    %c0_9 = arith.constant 0 : index
    %c192 = arith.constant 192 : index
    %16 = vector.load %arg1[%c0_8, %c0_9, %c192] : memref<2x64x512xbf16, #tpu.memory_space<vmem>>, vector<1x64x64xbf16>
    %17 = vector.shape_cast %16 : vector<1x64x64xbf16> to vector<64x64xbf16>
    %cst_10 = arith.constant 0.000000e+00 : f32
    %18 = vector.broadcast %cst_10 : f32 to vector<8x64xf32>
    %19 = vector.extract_strided_slice %15 {offsets = [0, 0], sizes = [8, 16], strides = [1, 1]} : vector<8x192xbf16> to vector<8x16xbf16>
    %20 = vector.extract_strided_slice %15 {offsets = [0, 64], sizes = [8, 16], strides = [1, 1]} : vector<8x192xbf16> to vector<8x16xbf16>
    %21 = vector.extract_strided_slice %15 {offsets = [0, 128], sizes = [8, 16], strides = [1, 1]} : vector<8x192xbf16> to vector<8x16xbf16>
    %cst_11 = arith.constant dense<0.000000e+00> : vector<8x8xf32>
    %22 = tpu.matmul %19, %20, %cst_11 {dimension_numbers = #tpu.dot_dimension_numbers<[1], [1], [0], [0], [0, 0, 1, 0], [], []>} : vector<8x16xbf16>, vector<8x16xbf16>, vector<8x8xf32> -> vector<8x8xf32>
    %cst_12 = arith.constant dense<0xFF800000> : vector<8xf32>
    %23 = vector.multi_reduction <maximumf>, %22, %cst_12 [1] : vector<8x8xf32> to vector<8xf32>
    %24 = vector.shape_cast %23 : vector<8xf32> to vector<8x1xf32>
    %25 = vector.broadcast %24 : vector<8x1xf32> to vector<8x8xf32>
    %26 = arith.subf %22, %25 : vector<8x8xf32>
    %27 = math.exp %26 : vector<8x8xf32>
    %cst_13 = arith.constant dense<0.000000e+00> : vector<8xf32>
    %28 = vector.multi_reduction <add>, %27, %cst_13 [1] : vector<8x8xf32> to vector<8xf32>
    %29 = vector.shape_cast %28 : vector<8xf32> to vector<8x1xf32>
    %30 = tpu.reciprocal %29 {approx = true} : vector<8x1xf32> -> vector<8x1xf32>
    %31 = vector.broadcast %30 : vector<8x1xf32> to vector<8x8xf32>
    %32 = arith.mulf %27, %31 : vector<8x8xf32>
    %33 = arith.truncf %32 : vector<8x8xf32> to vector<8x8xbf16>
    %cst_14 = arith.constant dense<0.000000e+00> : vector<8x16xf32>
    %34 = tpu.matmul %33, %21, %cst_14 {dimension_numbers = #tpu.dot_dimension_numbers<[1], [0], [0], [1], [0, 0, 1, 1], [], []>} : vector<8x8xbf16>, vector<8x16xbf16>, vector<8x16xf32> -> vector<8x16xf32>
    %35 = arith.truncf %34 : vector<8x16xf32> to vector<8x16xbf16>
    %36 = vector.extract_strided_slice %17 {offsets = [0, 0], sizes = [16, 64], strides = [1, 1]} : vector<64x64xbf16> to vector<16x64xbf16>
    %cst_15 = arith.constant dense<0.000000e+00> : vector<8x64xf32>
    %37 = tpu.matmul %35, %36, %cst_15 {dimension_numbers = #tpu.dot_dimension_numbers<[1], [0], [0], [1], [0, 0, 1, 1], [], []>} : vector<8x16xbf16>, vector<16x64xbf16>, vector<8x64xf32> -> vector<8x64xf32>
    %38 = arith.addf %18, %37 : vector<8x64xf32>
    %39 = vector.extract_strided_slice %15 {offsets = [0, 16], sizes = [8, 16], strides = [1, 1]} : vector<8x192xbf16> to vector<8x16xbf16>
    %40 = vector.extract_strided_slice %15 {offsets = [0, 80], sizes = [8, 16], strides = [1, 1]} : vector<8x192xbf16> to vector<8x16xbf16>
    %41 = vector.extract_strided_slice %15 {offsets = [0, 144], sizes = [8, 16], strides = [1, 1]} : vector<8x192xbf16> to vector<8x16xbf16>
    %cst_16 = arith.constant dense<0.000000e+00> : vector<8x8xf32>
    %42 = tpu.matmul %39, %40, %cst_16 {dimension_numbers = #tpu.dot_dimension_numbers<[1], [1], [0], [0], [0, 0, 1, 0], [], []>} : vector<8x16xbf16>, vector<8x16xbf16>, vector<8x8xf32> -> vector<8x8xf32>
    %cst_17 = arith.constant dense<0xFF800000> : vector<8xf32>
    %43 = vector.multi_reduction <maximumf>, %42, %cst_17 [1] : vector<8x8xf32> to vector<8xf32>
    %44 = vector.shape_cast %43 : vector<8xf32> to vector<8x1xf32>
    %45 = vector.broadcast %44 : vector<8x1xf32> to vector<8x8xf32>
    %46 = arith.subf %42, %45 : vector<8x8xf32>
    %47 = math.exp %46 : vector<8x8xf32>
    %cst_18 = arith.constant dense<0.000000e+00> : vector<8xf32>
    %48 = vector.multi_reduction <add>, %47, %cst_18 [1] : vector<8x8xf32> to vector<8xf32>
    %49 = vector.shape_cast %48 : vector<8xf32> to vector<8x1xf32>
    %50 = tpu.reciprocal %49 {approx = true} : vector<8x1xf32> -> vector<8x1xf32>
    %51 = vector.broadcast %50 : vector<8x1xf32> to vector<8x8xf32>
    %52 = arith.mulf %47, %51 : vector<8x8xf32>
    %53 = arith.truncf %52 : vector<8x8xf32> to vector<8x8xbf16>
    %cst_19 = arith.constant dense<0.000000e+00> : vector<8x16xf32>
    %54 = tpu.matmul %53, %41, %cst_19 {dimension_numbers = #tpu.dot_dimension_numbers<[1], [0], [0], [1], [0, 0, 1, 1], [], []>} : vector<8x8xbf16>, vector<8x16xbf16>, vector<8x16xf32> -> vector<8x16xf32>
    %55 = arith.truncf %54 : vector<8x16xf32> to vector<8x16xbf16>
    %56 = vector.extract_strided_slice %17 {offsets = [16, 0], sizes = [16, 64], strides = [1, 1]} : vector<64x64xbf16> to vector<16x64xbf16>
    %cst_20 = arith.constant dense<0.000000e+00> : vector<8x64xf32>
    %57 = tpu.matmul %55, %56, %cst_20 {dimension_numbers = #tpu.dot_dimension_numbers<[1], [0], [0], [1], [0, 0, 1, 1], [], []>} : vector<8x16xbf16>, vector<16x64xbf16>, vector<8x64xf32> -> vector<8x64xf32>
    %58 = arith.addf %38, %57 : vector<8x64xf32>
    %59 = vector.extract_strided_slice %15 {offsets = [0, 32], sizes = [8, 16], strides = [1, 1]} : vector<8x192xbf16> to vector<8x16xbf16>
    %60 = vector.extract_strided_slice %15 {offsets = [0, 96], sizes = [8, 16], strides = [1, 1]} : vector<8x192xbf16> to vector<8x16xbf16>
    %61 = vector.extract_strided_slice %15 {offsets = [0, 160], sizes = [8, 16], strides = [1, 1]} : vector<8x192xbf16> to vector<8x16xbf16>
    %cst_21 = arith.constant dense<0.000000e+00> : vector<8x8xf32>
    %62 = tpu.matmul %59, %60, %cst_21 {dimension_numbers = #tpu.dot_dimension_numbers<[1], [1], [0], [0], [0, 0, 1, 0], [], []>} : vector<8x16xbf16>, vector<8x16xbf16>, vector<8x8xf32> -> vector<8x8xf32>
    %cst_22 = arith.constant dense<0xFF800000> : vector<8xf32>
    %63 = vector.multi_reduction <maximumf>, %62, %cst_22 [1] : vector<8x8xf32> to vector<8xf32>
    %64 = vector.shape_cast %63 : vector<8xf32> to vector<8x1xf32>
    %65 = vector.broadcast %64 : vector<8x1xf32> to vector<8x8xf32>
    %66 = arith.subf %62, %65 : vector<8x8xf32>
    %67 = math.exp %66 : vector<8x8xf32>
    %cst_23 = arith.constant dense<0.000000e+00> : vector<8xf32>
    %68 = vector.multi_reduction <add>, %67, %cst_23 [1] : vector<8x8xf32> to vector<8xf32>
    %69 = vector.shape_cast %68 : vector<8xf32> to vector<8x1xf32>
    %70 = tpu.reciprocal %69 {approx = true} : vector<8x1xf32> -> vector<8x1xf32>
    %71 = vector.broadcast %70 : vector<8x1xf32> to vector<8x8xf32>
    %72 = arith.mulf %67, %71 : vector<8x8xf32>
    %73 = arith.truncf %72 : vector<8x8xf32> to vector<8x8xbf16>
    %cst_24 = arith.constant dense<0.000000e+00> : vector<8x16xf32>
    %74 = tpu.matmul %73, %61, %cst_24 {dimension_numbers = #tpu.dot_dimension_numbers<[1], [0], [0], [1], [0, 0, 1, 1], [], []>} : vector<8x8xbf16>, vector<8x16xbf16>, vector<8x16xf32> -> vector<8x16xf32>
    %75 = arith.truncf %74 : vector<8x16xf32> to vector<8x16xbf16>
    %76 = vector.extract_strided_slice %17 {offsets = [32, 0], sizes = [16, 64], strides = [1, 1]} : vector<64x64xbf16> to vector<16x64xbf16>
    %cst_25 = arith.constant dense<0.000000e+00> : vector<8x64xf32>
    %77 = tpu.matmul %75, %76, %cst_25 {dimension_numbers = #tpu.dot_dimension_numbers<[1], [0], [0], [1], [0, 0, 1, 1], [], []>} : vector<8x16xbf16>, vector<16x64xbf16>, vector<8x64xf32> -> vector<8x64xf32>
    %78 = arith.addf %58, %77 : vector<8x64xf32>
    %79 = vector.extract_strided_slice %15 {offsets = [0, 48], sizes = [8, 16], strides = [1, 1]} : vector<8x192xbf16> to vector<8x16xbf16>
    %80 = vector.extract_strided_slice %15 {offsets = [0, 112], sizes = [8, 16], strides = [1, 1]} : vector<8x192xbf16> to vector<8x16xbf16>
    %81 = vector.extract_strided_slice %15 {offsets = [0, 176], sizes = [8, 16], strides = [1, 1]} : vector<8x192xbf16> to vector<8x16xbf16>
    %cst_26 = arith.constant dense<0.000000e+00> : vector<8x8xf32>
    %82 = tpu.matmul %79, %80, %cst_26 {dimension_numbers = #tpu.dot_dimension_numbers<[1], [1], [0], [0], [0, 0, 1, 0], [], []>} : vector<8x16xbf16>, vector<8x16xbf16>, vector<8x8xf32> -> vector<8x8xf32>
    %cst_27 = arith.constant dense<0xFF800000> : vector<8xf32>
    %83 = vector.multi_reduction <maximumf>, %82, %cst_27 [1] : vector<8x8xf32> to vector<8xf32>
    %84 = vector.shape_cast %83 : vector<8xf32> to vector<8x1xf32>
    %85 = vector.broadcast %84 : vector<8x1xf32> to vector<8x8xf32>
    %86 = arith.subf %82, %85 : vector<8x8xf32>
    %87 = math.exp %86 : vector<8x8xf32>
    %cst_28 = arith.constant dense<0.000000e+00> : vector<8xf32>
    %88 = vector.multi_reduction <add>, %87, %cst_28 [1] : vector<8x8xf32> to vector<8xf32>
    %89 = vector.shape_cast %88 : vector<8xf32> to vector<8x1xf32>
    %90 = tpu.reciprocal %89 {approx = true} : vector<8x1xf32> -> vector<8x1xf32>
    %91 = vector.broadcast %90 : vector<8x1xf32> to vector<8x8xf32>
    %92 = arith.mulf %87, %91 : vector<8x8xf32>
    %93 = arith.truncf %92 : vector<8x8xf32> to vector<8x8xbf16>
    %cst_29 = arith.constant dense<0.000000e+00> : vector<8x16xf32>
    %94 = tpu.matmul %93, %81, %cst_29 {dimension_numbers = #tpu.dot_dimension_numbers<[1], [0], [0], [1], [0, 0, 1, 1], [], []>} : vector<8x8xbf16>, vector<8x16xbf16>, vector<8x16xf32> -> vector<8x16xf32>
    %95 = arith.truncf %94 : vector<8x16xf32> to vector<8x16xbf16>
    %96 = vector.extract_strided_slice %17 {offsets = [48, 0], sizes = [16, 64], strides = [1, 1]} : vector<64x64xbf16> to vector<16x64xbf16>
    %cst_30 = arith.constant dense<0.000000e+00> : vector<8x64xf32>
    %97 = tpu.matmul %95, %96, %cst_30 {dimension_numbers = #tpu.dot_dimension_numbers<[1], [0], [0], [1], [0, 0, 1, 1], [], []>} : vector<8x16xbf16>, vector<16x64xbf16>, vector<8x64xf32> -> vector<8x64xf32>
    %98 = arith.addf %78, %97 : vector<8x64xf32>
    %c3 = arith.constant 3 : index
    %c0_31 = arith.constant 0 : index
    %99 = vector.load %arg3[%c3, %c0_31] : memref<21x256xf32, #tpu.memory_space<vmem>>, vector<1x64xf32>
    %100 = vector.broadcast %99 : vector<1x64xf32> to vector<8x64xf32>
    %101 = arith.addf %98, %100 : vector<8x64xf32>
    %102 = arith.addf %7, %101 : vector<8x64xf32>
    %c4 = arith.constant 4 : index
    %c0_32 = arith.constant 0 : index
    %103 = vector.load %arg3[%c4, %c0_32] : memref<21x256xf32, #tpu.memory_space<vmem>>, vector<1x64xf32>
    %c5 = arith.constant 5 : index
    %c0_33 = arith.constant 0 : index
    %104 = vector.load %arg3[%c5, %c0_33] : memref<21x256xf32, #tpu.memory_space<vmem>>, vector<1x64xf32>
    %cst_34 = arith.constant dense<0.000000e+00> : vector<8xf32>
    %105 = vector.multi_reduction <add>, %102, %cst_34 [1] : vector<8x64xf32> to vector<8xf32>
    %106 = vector.shape_cast %105 : vector<8xf32> to vector<8x1xf32>
    %cst_35 = arith.constant 6.400000e+01 : f32
    %107 = vector.broadcast %cst_35 : f32 to vector<8x1xf32>
    %108 = arith.divf %106, %107 : vector<8x1xf32>
    %109 = vector.broadcast %108 : vector<8x1xf32> to vector<8x64xf32>
    %110 = arith.subf %102, %109 : vector<8x64xf32>
    %111 = arith.mulf %110, %110 : vector<8x64xf32>
    %cst_36 = arith.constant dense<0.000000e+00> : vector<8xf32>
    %112 = vector.multi_reduction <add>, %111, %cst_36 [1] : vector<8x64xf32> to vector<8xf32>
    %113 = vector.shape_cast %112 : vector<8xf32> to vector<8x1xf32>
    %cst_37 = arith.constant 6.400000e+01 : f32
    %114 = vector.broadcast %cst_37 : f32 to vector<8x1xf32>
    %115 = arith.divf %113, %114 : vector<8x1xf32>
    %116 = vector.broadcast %108 : vector<8x1xf32> to vector<8x64xf32>
    %117 = arith.subf %102, %116 : vector<8x64xf32>
    %cst_38 = arith.constant 9.99999974E-6 : f32
    %118 = vector.broadcast %cst_38 : f32 to vector<8x1xf32>
    %119 = arith.addf %115, %118 : vector<8x1xf32>
    %120 = math.rsqrt %119 : vector<8x1xf32>
    %121 = vector.broadcast %120 : vector<8x1xf32> to vector<8x64xf32>
    %122 = arith.mulf %117, %121 : vector<8x64xf32>
    %123 = vector.broadcast %103 : vector<1x64xf32> to vector<8x64xf32>
    %124 = arith.mulf %122, %123 : vector<8x64xf32>
    %125 = vector.broadcast %104 : vector<1x64xf32> to vector<8x64xf32>
    %126 = arith.addf %124, %125 : vector<8x64xf32>
    %127 = arith.truncf %126 : vector<8x64xf32> to vector<8x64xbf16>
    %c0_39 = arith.constant 0 : index
    %c0_40 = arith.constant 0 : index
    %c256 = arith.constant 256 : index
    %128 = vector.load %arg1[%c0_39, %c0_40, %c256] : memref<2x64x512xbf16, #tpu.memory_space<vmem>>, vector<1x64x256xbf16>
    %129 = vector.shape_cast %128 : vector<1x64x256xbf16> to vector<64x256xbf16>
    %cst_41 = arith.constant dense<0.000000e+00> : vector<8x256xf32>
    %130 = tpu.matmul %127, %129, %cst_41 {dimension_numbers = #tpu.dot_dimension_numbers<[1], [0], [0], [1], [0, 0, 1, 1], [], []>} : vector<8x64xbf16>, vector<64x256xbf16>, vector<8x256xf32> -> vector<8x256xf32>
    %c6 = arith.constant 6 : index
    %c0_42 = arith.constant 0 : index
    %131 = vector.load %arg3[%c6, %c0_42] : memref<21x256xf32, #tpu.memory_space<vmem>>, vector<1x256xf32>
    %132 = vector.broadcast %131 : vector<1x256xf32> to vector<8x256xf32>
    %133 = arith.addf %130, %132 : vector<8x256xf32>
    %cst_43 = arith.constant 0.000000e+00 : f32
    %134 = vector.broadcast %cst_43 : f32 to vector<8x256xf32>
    %135 = arith.maximumf %133, %134 : vector<8x256xf32>
    %136 = arith.truncf %135 : vector<8x256xf32> to vector<8x256xbf16>
    %c0_44 = arith.constant 0 : index
    %c0_45 = arith.constant 0 : index
    %c0_46 = arith.constant 0 : index
    %137 = vector.load %arg2[%c0_44, %c0_45, %c0_46] : memref<2x256x64xbf16, #tpu.memory_space<vmem>>, vector<1x256x64xbf16>
    %138 = vector.shape_cast %137 : vector<1x256x64xbf16> to vector<256x64xbf16>
    %cst_47 = arith.constant dense<0.000000e+00> : vector<8x64xf32>
    %139 = tpu.matmul %136, %138, %cst_47 {dimension_numbers = #tpu.dot_dimension_numbers<[1], [0], [0], [1], [0, 0, 1, 1], [], []>} : vector<8x256xbf16>, vector<256x64xbf16>, vector<8x64xf32> -> vector<8x64xf32>
    %c7 = arith.constant 7 : index
    %c0_48 = arith.constant 0 : index
    %140 = vector.load %arg3[%c7, %c0_48] : memref<21x256xf32, #tpu.memory_space<vmem>>, vector<1x64xf32>
    %141 = vector.broadcast %140 : vector<1x64xf32> to vector<8x64xf32>
    %142 = arith.addf %139, %141 : vector<8x64xf32>
    %143 = arith.addf %126, %142 : vector<8x64xf32>
    %c8 = arith.constant 8 : index
    %c0_49 = arith.constant 0 : index
    %144 = vector.load %arg3[%c8, %c0_49] : memref<21x256xf32, #tpu.memory_space<vmem>>, vector<1x64xf32>
    %c9 = arith.constant 9 : index
    %c0_50 = arith.constant 0 : index
    %145 = vector.load %arg3[%c9, %c0_50] : memref<21x256xf32, #tpu.memory_space<vmem>>, vector<1x64xf32>
    %cst_51 = arith.constant dense<0.000000e+00> : vector<8xf32>
    %146 = vector.multi_reduction <add>, %143, %cst_51 [1] : vector<8x64xf32> to vector<8xf32>
    %147 = vector.shape_cast %146 : vector<8xf32> to vector<8x1xf32>
    %cst_52 = arith.constant 6.400000e+01 : f32
    %148 = vector.broadcast %cst_52 : f32 to vector<8x1xf32>
    %149 = arith.divf %147, %148 : vector<8x1xf32>
    %150 = vector.broadcast %149 : vector<8x1xf32> to vector<8x64xf32>
    %151 = arith.subf %143, %150 : vector<8x64xf32>
    %152 = arith.mulf %151, %151 : vector<8x64xf32>
    %cst_53 = arith.constant dense<0.000000e+00> : vector<8xf32>
    %153 = vector.multi_reduction <add>, %152, %cst_53 [1] : vector<8x64xf32> to vector<8xf32>
    %154 = vector.shape_cast %153 : vector<8xf32> to vector<8x1xf32>
    %cst_54 = arith.constant 6.400000e+01 : f32
    %155 = vector.broadcast %cst_54 : f32 to vector<8x1xf32>
    %156 = arith.divf %154, %155 : vector<8x1xf32>
    %157 = vector.broadcast %149 : vector<8x1xf32> to vector<8x64xf32>
    %158 = arith.subf %143, %157 : vector<8x64xf32>
    %cst_55 = arith.constant 9.99999974E-6 : f32
    %159 = vector.broadcast %cst_55 : f32 to vector<8x1xf32>
    %160 = arith.addf %156, %159 : vector<8x1xf32>
    %161 = math.rsqrt %160 : vector<8x1xf32>
    %162 = vector.broadcast %161 : vector<8x1xf32> to vector<8x64xf32>
    %163 = arith.mulf %158, %162 : vector<8x64xf32>
    %164 = vector.broadcast %144 : vector<1x64xf32> to vector<8x64xf32>
    %165 = arith.mulf %163, %164 : vector<8x64xf32>
    %166 = vector.broadcast %145 : vector<1x64xf32> to vector<8x64xf32>
    %167 = arith.addf %165, %166 : vector<8x64xf32>
    %168 = arith.truncf %167 : vector<8x64xf32> to vector<8x64xbf16>
    %c1_56 = arith.constant 1 : index
    %c0_57 = arith.constant 0 : index
    %c0_58 = arith.constant 0 : index
    %169 = vector.load %arg1[%c1_56, %c0_57, %c0_58] : memref<2x64x512xbf16, #tpu.memory_space<vmem>>, vector<1x64x192xbf16>
    %170 = vector.shape_cast %169 : vector<1x64x192xbf16> to vector<64x192xbf16>
    %cst_59 = arith.constant dense<0.000000e+00> : vector<8x192xf32>
    %171 = tpu.matmul %168, %170, %cst_59 {dimension_numbers = #tpu.dot_dimension_numbers<[1], [0], [0], [1], [0, 0, 1, 1], [], []>} : vector<8x64xbf16>, vector<64x192xbf16>, vector<8x192xf32> -> vector<8x192xf32>
    %c10 = arith.constant 10 : index
    %c0_60 = arith.constant 0 : index
    %172 = vector.load %arg3[%c10, %c0_60] : memref<21x256xf32, #tpu.memory_space<vmem>>, vector<1x192xf32>
    %173 = vector.broadcast %172 : vector<1x192xf32> to vector<8x192xf32>
    %174 = arith.addf %171, %173 : vector<8x192xf32>
    %175 = arith.truncf %174 : vector<8x192xf32> to vector<8x192xbf16>
    %c1_61 = arith.constant 1 : index
    %c0_62 = arith.constant 0 : index
    %c192_63 = arith.constant 192 : index
    %176 = vector.load %arg1[%c1_61, %c0_62, %c192_63] : memref<2x64x512xbf16, #tpu.memory_space<vmem>>, vector<1x64x64xbf16>
    %177 = vector.shape_cast %176 : vector<1x64x64xbf16> to vector<64x64xbf16>
    %cst_64 = arith.constant 0.000000e+00 : f32
    %178 = vector.broadcast %cst_64 : f32 to vector<8x64xf32>
    %179 = vector.extract_strided_slice %175 {offsets = [0, 0], sizes = [8, 16], strides = [1, 1]} : vector<8x192xbf16> to vector<8x16xbf16>
    %180 = vector.extract_strided_slice %175 {offsets = [0, 64], sizes = [8, 16], strides = [1, 1]} : vector<8x192xbf16> to vector<8x16xbf16>
    %181 = vector.extract_strided_slice %175 {offsets = [0, 128], sizes = [8, 16], strides = [1, 1]} : vector<8x192xbf16> to vector<8x16xbf16>
    %cst_65 = arith.constant dense<0.000000e+00> : vector<8x8xf32>
    %182 = tpu.matmul %179, %180, %cst_65 {dimension_numbers = #tpu.dot_dimension_numbers<[1], [1], [0], [0], [0, 0, 1, 0], [], []>} : vector<8x16xbf16>, vector<8x16xbf16>, vector<8x8xf32> -> vector<8x8xf32>
    %cst_66 = arith.constant dense<0xFF800000> : vector<8xf32>
    %183 = vector.multi_reduction <maximumf>, %182, %cst_66 [1] : vector<8x8xf32> to vector<8xf32>
    %184 = vector.shape_cast %183 : vector<8xf32> to vector<8x1xf32>
    %185 = vector.broadcast %184 : vector<8x1xf32> to vector<8x8xf32>
    %186 = arith.subf %182, %185 : vector<8x8xf32>
    %187 = math.exp %186 : vector<8x8xf32>
    %cst_67 = arith.constant dense<0.000000e+00> : vector<8xf32>
    %188 = vector.multi_reduction <add>, %187, %cst_67 [1] : vector<8x8xf32> to vector<8xf32>
    %189 = vector.shape_cast %188 : vector<8xf32> to vector<8x1xf32>
    %190 = tpu.reciprocal %189 {approx = true} : vector<8x1xf32> -> vector<8x1xf32>
    %191 = vector.broadcast %190 : vector<8x1xf32> to vector<8x8xf32>
    %192 = arith.mulf %187, %191 : vector<8x8xf32>
    %193 = arith.truncf %192 : vector<8x8xf32> to vector<8x8xbf16>
    %cst_68 = arith.constant dense<0.000000e+00> : vector<8x16xf32>
    %194 = tpu.matmul %193, %181, %cst_68 {dimension_numbers = #tpu.dot_dimension_numbers<[1], [0], [0], [1], [0, 0, 1, 1], [], []>} : vector<8x8xbf16>, vector<8x16xbf16>, vector<8x16xf32> -> vector<8x16xf32>
    %195 = arith.truncf %194 : vector<8x16xf32> to vector<8x16xbf16>
    %196 = vector.extract_strided_slice %177 {offsets = [0, 0], sizes = [16, 64], strides = [1, 1]} : vector<64x64xbf16> to vector<16x64xbf16>
    %cst_69 = arith.constant dense<0.000000e+00> : vector<8x64xf32>
    %197 = tpu.matmul %195, %196, %cst_69 {dimension_numbers = #tpu.dot_dimension_numbers<[1], [0], [0], [1], [0, 0, 1, 1], [], []>} : vector<8x16xbf16>, vector<16x64xbf16>, vector<8x64xf32> -> vector<8x64xf32>
    %198 = arith.addf %178, %197 : vector<8x64xf32>
    %199 = vector.extract_strided_slice %175 {offsets = [0, 16], sizes = [8, 16], strides = [1, 1]} : vector<8x192xbf16> to vector<8x16xbf16>
    %200 = vector.extract_strided_slice %175 {offsets = [0, 80], sizes = [8, 16], strides = [1, 1]} : vector<8x192xbf16> to vector<8x16xbf16>
    %201 = vector.extract_strided_slice %175 {offsets = [0, 144], sizes = [8, 16], strides = [1, 1]} : vector<8x192xbf16> to vector<8x16xbf16>
    %cst_70 = arith.constant dense<0.000000e+00> : vector<8x8xf32>
    %202 = tpu.matmul %199, %200, %cst_70 {dimension_numbers = #tpu.dot_dimension_numbers<[1], [1], [0], [0], [0, 0, 1, 0], [], []>} : vector<8x16xbf16>, vector<8x16xbf16>, vector<8x8xf32> -> vector<8x8xf32>
    %cst_71 = arith.constant dense<0xFF800000> : vector<8xf32>
    %203 = vector.multi_reduction <maximumf>, %202, %cst_71 [1] : vector<8x8xf32> to vector<8xf32>
    %204 = vector.shape_cast %203 : vector<8xf32> to vector<8x1xf32>
    %205 = vector.broadcast %204 : vector<8x1xf32> to vector<8x8xf32>
    %206 = arith.subf %202, %205 : vector<8x8xf32>
    %207 = math.exp %206 : vector<8x8xf32>
    %cst_72 = arith.constant dense<0.000000e+00> : vector<8xf32>
    %208 = vector.multi_reduction <add>, %207, %cst_72 [1] : vector<8x8xf32> to vector<8xf32>
    %209 = vector.shape_cast %208 : vector<8xf32> to vector<8x1xf32>
    %210 = tpu.reciprocal %209 {approx = true} : vector<8x1xf32> -> vector<8x1xf32>
    %211 = vector.broadcast %210 : vector<8x1xf32> to vector<8x8xf32>
    %212 = arith.mulf %207, %211 : vector<8x8xf32>
    %213 = arith.truncf %212 : vector<8x8xf32> to vector<8x8xbf16>
    %cst_73 = arith.constant dense<0.000000e+00> : vector<8x16xf32>
    %214 = tpu.matmul %213, %201, %cst_73 {dimension_numbers = #tpu.dot_dimension_numbers<[1], [0], [0], [1], [0, 0, 1, 1], [], []>} : vector<8x8xbf16>, vector<8x16xbf16>, vector<8x16xf32> -> vector<8x16xf32>
    %215 = arith.truncf %214 : vector<8x16xf32> to vector<8x16xbf16>
    %216 = vector.extract_strided_slice %177 {offsets = [16, 0], sizes = [16, 64], strides = [1, 1]} : vector<64x64xbf16> to vector<16x64xbf16>
    %cst_74 = arith.constant dense<0.000000e+00> : vector<8x64xf32>
    %217 = tpu.matmul %215, %216, %cst_74 {dimension_numbers = #tpu.dot_dimension_numbers<[1], [0], [0], [1], [0, 0, 1, 1], [], []>} : vector<8x16xbf16>, vector<16x64xbf16>, vector<8x64xf32> -> vector<8x64xf32>
    %218 = arith.addf %198, %217 : vector<8x64xf32>
    %219 = vector.extract_strided_slice %175 {offsets = [0, 32], sizes = [8, 16], strides = [1, 1]} : vector<8x192xbf16> to vector<8x16xbf16>
    %220 = vector.extract_strided_slice %175 {offsets = [0, 96], sizes = [8, 16], strides = [1, 1]} : vector<8x192xbf16> to vector<8x16xbf16>
    %221 = vector.extract_strided_slice %175 {offsets = [0, 160], sizes = [8, 16], strides = [1, 1]} : vector<8x192xbf16> to vector<8x16xbf16>
    %cst_75 = arith.constant dense<0.000000e+00> : vector<8x8xf32>
    %222 = tpu.matmul %219, %220, %cst_75 {dimension_numbers = #tpu.dot_dimension_numbers<[1], [1], [0], [0], [0, 0, 1, 0], [], []>} : vector<8x16xbf16>, vector<8x16xbf16>, vector<8x8xf32> -> vector<8x8xf32>
    %cst_76 = arith.constant dense<0xFF800000> : vector<8xf32>
    %223 = vector.multi_reduction <maximumf>, %222, %cst_76 [1] : vector<8x8xf32> to vector<8xf32>
    %224 = vector.shape_cast %223 : vector<8xf32> to vector<8x1xf32>
    %225 = vector.broadcast %224 : vector<8x1xf32> to vector<8x8xf32>
    %226 = arith.subf %222, %225 : vector<8x8xf32>
    %227 = math.exp %226 : vector<8x8xf32>
    %cst_77 = arith.constant dense<0.000000e+00> : vector<8xf32>
    %228 = vector.multi_reduction <add>, %227, %cst_77 [1] : vector<8x8xf32> to vector<8xf32>
    %229 = vector.shape_cast %228 : vector<8xf32> to vector<8x1xf32>
    %230 = tpu.reciprocal %229 {approx = true} : vector<8x1xf32> -> vector<8x1xf32>
    %231 = vector.broadcast %230 : vector<8x1xf32> to vector<8x8xf32>
    %232 = arith.mulf %227, %231 : vector<8x8xf32>
    %233 = arith.truncf %232 : vector<8x8xf32> to vector<8x8xbf16>
    %cst_78 = arith.constant dense<0.000000e+00> : vector<8x16xf32>
    %234 = tpu.matmul %233, %221, %cst_78 {dimension_numbers = #tpu.dot_dimension_numbers<[1], [0], [0], [1], [0, 0, 1, 1], [], []>} : vector<8x8xbf16>, vector<8x16xbf16>, vector<8x16xf32> -> vector<8x16xf32>
    %235 = arith.truncf %234 : vector<8x16xf32> to vector<8x16xbf16>
    %236 = vector.extract_strided_slice %177 {offsets = [32, 0], sizes = [16, 64], strides = [1, 1]} : vector<64x64xbf16> to vector<16x64xbf16>
    %cst_79 = arith.constant dense<0.000000e+00> : vector<8x64xf32>
    %237 = tpu.matmul %235, %236, %cst_79 {dimension_numbers = #tpu.dot_dimension_numbers<[1], [0], [0], [1], [0, 0, 1, 1], [], []>} : vector<8x16xbf16>, vector<16x64xbf16>, vector<8x64xf32> -> vector<8x64xf32>
    %238 = arith.addf %218, %237 : vector<8x64xf32>
    %239 = vector.extract_strided_slice %175 {offsets = [0, 48], sizes = [8, 16], strides = [1, 1]} : vector<8x192xbf16> to vector<8x16xbf16>
    %240 = vector.extract_strided_slice %175 {offsets = [0, 112], sizes = [8, 16], strides = [1, 1]} : vector<8x192xbf16> to vector<8x16xbf16>
    %241 = vector.extract_strided_slice %175 {offsets = [0, 176], sizes = [8, 16], strides = [1, 1]} : vector<8x192xbf16> to vector<8x16xbf16>
    %cst_80 = arith.constant dense<0.000000e+00> : vector<8x8xf32>
    %242 = tpu.matmul %239, %240, %cst_80 {dimension_numbers = #tpu.dot_dimension_numbers<[1], [1], [0], [0], [0, 0, 1, 0], [], []>} : vector<8x16xbf16>, vector<8x16xbf16>, vector<8x8xf32> -> vector<8x8xf32>
    %cst_81 = arith.constant dense<0xFF800000> : vector<8xf32>
    %243 = vector.multi_reduction <maximumf>, %242, %cst_81 [1] : vector<8x8xf32> to vector<8xf32>
    %244 = vector.shape_cast %243 : vector<8xf32> to vector<8x1xf32>
    %245 = vector.broadcast %244 : vector<8x1xf32> to vector<8x8xf32>
    %246 = arith.subf %242, %245 : vector<8x8xf32>
    %247 = math.exp %246 : vector<8x8xf32>
    %cst_82 = arith.constant dense<0.000000e+00> : vector<8xf32>
    %248 = vector.multi_reduction <add>, %247, %cst_82 [1] : vector<8x8xf32> to vector<8xf32>
    %249 = vector.shape_cast %248 : vector<8xf32> to vector<8x1xf32>
    %250 = tpu.reciprocal %249 {approx = true} : vector<8x1xf32> -> vector<8x1xf32>
    %251 = vector.broadcast %250 : vector<8x1xf32> to vector<8x8xf32>
    %252 = arith.mulf %247, %251 : vector<8x8xf32>
    %253 = arith.truncf %252 : vector<8x8xf32> to vector<8x8xbf16>
    %cst_83 = arith.constant dense<0.000000e+00> : vector<8x16xf32>
    %254 = tpu.matmul %253, %241, %cst_83 {dimension_numbers = #tpu.dot_dimension_numbers<[1], [0], [0], [1], [0, 0, 1, 1], [], []>} : vector<8x8xbf16>, vector<8x16xbf16>, vector<8x16xf32> -> vector<8x16xf32>
    %255 = arith.truncf %254 : vector<8x16xf32> to vector<8x16xbf16>
    %256 = vector.extract_strided_slice %177 {offsets = [48, 0], sizes = [16, 64], strides = [1, 1]} : vector<64x64xbf16> to vector<16x64xbf16>
    %cst_84 = arith.constant dense<0.000000e+00> : vector<8x64xf32>
    %257 = tpu.matmul %255, %256, %cst_84 {dimension_numbers = #tpu.dot_dimension_numbers<[1], [0], [0], [1], [0, 0, 1, 1], [], []>} : vector<8x16xbf16>, vector<16x64xbf16>, vector<8x64xf32> -> vector<8x64xf32>
    %258 = arith.addf %238, %257 : vector<8x64xf32>
    %c11 = arith.constant 11 : index
    %c0_85 = arith.constant 0 : index
    %259 = vector.load %arg3[%c11, %c0_85] : memref<21x256xf32, #tpu.memory_space<vmem>>, vector<1x64xf32>
    %260 = vector.broadcast %259 : vector<1x64xf32> to vector<8x64xf32>
    %261 = arith.addf %258, %260 : vector<8x64xf32>
    %262 = arith.addf %167, %261 : vector<8x64xf32>
    %c12 = arith.constant 12 : index
    %c0_86 = arith.constant 0 : index
    %263 = vector.load %arg3[%c12, %c0_86] : memref<21x256xf32, #tpu.memory_space<vmem>>, vector<1x64xf32>
    %c13 = arith.constant 13 : index
    %c0_87 = arith.constant 0 : index
    %264 = vector.load %arg3[%c13, %c0_87] : memref<21x256xf32, #tpu.memory_space<vmem>>, vector<1x64xf32>
    %cst_88 = arith.constant dense<0.000000e+00> : vector<8xf32>
    %265 = vector.multi_reduction <add>, %262, %cst_88 [1] : vector<8x64xf32> to vector<8xf32>
    %266 = vector.shape_cast %265 : vector<8xf32> to vector<8x1xf32>
    %cst_89 = arith.constant 6.400000e+01 : f32
    %267 = vector.broadcast %cst_89 : f32 to vector<8x1xf32>
    %268 = arith.divf %266, %267 : vector<8x1xf32>
    %269 = vector.broadcast %268 : vector<8x1xf32> to vector<8x64xf32>
    %270 = arith.subf %262, %269 : vector<8x64xf32>
    %271 = arith.mulf %270, %270 : vector<8x64xf32>
    %cst_90 = arith.constant dense<0.000000e+00> : vector<8xf32>
    %272 = vector.multi_reduction <add>, %271, %cst_90 [1] : vector<8x64xf32> to vector<8xf32>
    %273 = vector.shape_cast %272 : vector<8xf32> to vector<8x1xf32>
    %cst_91 = arith.constant 6.400000e+01 : f32
    %274 = vector.broadcast %cst_91 : f32 to vector<8x1xf32>
    %275 = arith.divf %273, %274 : vector<8x1xf32>
    %276 = vector.broadcast %268 : vector<8x1xf32> to vector<8x64xf32>
    %277 = arith.subf %262, %276 : vector<8x64xf32>
    %cst_92 = arith.constant 9.99999974E-6 : f32
    %278 = vector.broadcast %cst_92 : f32 to vector<8x1xf32>
    %279 = arith.addf %275, %278 : vector<8x1xf32>
    %280 = math.rsqrt %279 : vector<8x1xf32>
    %281 = vector.broadcast %280 : vector<8x1xf32> to vector<8x64xf32>
    %282 = arith.mulf %277, %281 : vector<8x64xf32>
    %283 = vector.broadcast %263 : vector<1x64xf32> to vector<8x64xf32>
    %284 = arith.mulf %282, %283 : vector<8x64xf32>
    %285 = vector.broadcast %264 : vector<1x64xf32> to vector<8x64xf32>
    %286 = arith.addf %284, %285 : vector<8x64xf32>
    %287 = arith.truncf %286 : vector<8x64xf32> to vector<8x64xbf16>
    %c1_93 = arith.constant 1 : index
    %c0_94 = arith.constant 0 : index
    %c256_95 = arith.constant 256 : index
    %288 = vector.load %arg1[%c1_93, %c0_94, %c256_95] : memref<2x64x512xbf16, #tpu.memory_space<vmem>>, vector<1x64x256xbf16>
    %289 = vector.shape_cast %288 : vector<1x64x256xbf16> to vector<64x256xbf16>
    %cst_96 = arith.constant dense<0.000000e+00> : vector<8x256xf32>
    %290 = tpu.matmul %287, %289, %cst_96 {dimension_numbers = #tpu.dot_dimension_numbers<[1], [0], [0], [1], [0, 0, 1, 1], [], []>} : vector<8x64xbf16>, vector<64x256xbf16>, vector<8x256xf32> -> vector<8x256xf32>
    %c14 = arith.constant 14 : index
    %c0_97 = arith.constant 0 : index
    %291 = vector.load %arg3[%c14, %c0_97] : memref<21x256xf32, #tpu.memory_space<vmem>>, vector<1x256xf32>
    %292 = vector.broadcast %291 : vector<1x256xf32> to vector<8x256xf32>
    %293 = arith.addf %290, %292 : vector<8x256xf32>
    %cst_98 = arith.constant 0.000000e+00 : f32
    %294 = vector.broadcast %cst_98 : f32 to vector<8x256xf32>
    %295 = arith.maximumf %293, %294 : vector<8x256xf32>
    %296 = arith.truncf %295 : vector<8x256xf32> to vector<8x256xbf16>
    %c1_99 = arith.constant 1 : index
    %c0_100 = arith.constant 0 : index
    %c0_101 = arith.constant 0 : index
    %297 = vector.load %arg2[%c1_99, %c0_100, %c0_101] : memref<2x256x64xbf16, #tpu.memory_space<vmem>>, vector<1x256x64xbf16>
    %298 = vector.shape_cast %297 : vector<1x256x64xbf16> to vector<256x64xbf16>
    %cst_102 = arith.constant dense<0.000000e+00> : vector<8x64xf32>
    %299 = tpu.matmul %296, %298, %cst_102 {dimension_numbers = #tpu.dot_dimension_numbers<[1], [0], [0], [1], [0, 0, 1, 1], [], []>} : vector<8x256xbf16>, vector<256x64xbf16>, vector<8x64xf32> -> vector<8x64xf32>
    %c15 = arith.constant 15 : index
    %c0_103 = arith.constant 0 : index
    %300 = vector.load %arg3[%c15, %c0_103] : memref<21x256xf32, #tpu.memory_space<vmem>>, vector<1x64xf32>
    %301 = vector.broadcast %300 : vector<1x64xf32> to vector<8x64xf32>
    %302 = arith.addf %299, %301 : vector<8x64xf32>
    %303 = arith.addf %286, %302 : vector<8x64xf32>
    %c16 = arith.constant 16 : index
    %c0_104 = arith.constant 0 : index
    %304 = vector.load %arg3[%c16, %c0_104] : memref<21x256xf32, #tpu.memory_space<vmem>>, vector<1x64xf32>
    %c17 = arith.constant 17 : index
    %c0_105 = arith.constant 0 : index
    %305 = vector.load %arg3[%c17, %c0_105] : memref<21x256xf32, #tpu.memory_space<vmem>>, vector<1x64xf32>
    %cst_106 = arith.constant dense<0.000000e+00> : vector<8xf32>
    %306 = vector.multi_reduction <add>, %303, %cst_106 [1] : vector<8x64xf32> to vector<8xf32>
    %307 = vector.shape_cast %306 : vector<8xf32> to vector<8x1xf32>
    %cst_107 = arith.constant 6.400000e+01 : f32
    %308 = vector.broadcast %cst_107 : f32 to vector<8x1xf32>
    %309 = arith.divf %307, %308 : vector<8x1xf32>
    %310 = vector.broadcast %309 : vector<8x1xf32> to vector<8x64xf32>
    %311 = arith.subf %303, %310 : vector<8x64xf32>
    %312 = arith.mulf %311, %311 : vector<8x64xf32>
    %cst_108 = arith.constant dense<0.000000e+00> : vector<8xf32>
    %313 = vector.multi_reduction <add>, %312, %cst_108 [1] : vector<8x64xf32> to vector<8xf32>
    %314 = vector.shape_cast %313 : vector<8xf32> to vector<8x1xf32>
    %cst_109 = arith.constant 6.400000e+01 : f32
    %315 = vector.broadcast %cst_109 : f32 to vector<8x1xf32>
    %316 = arith.divf %314, %315 : vector<8x1xf32>
    %317 = vector.broadcast %309 : vector<8x1xf32> to vector<8x64xf32>
    %318 = arith.subf %303, %317 : vector<8x64xf32>
    %cst_110 = arith.constant 9.99999974E-6 : f32
    %319 = vector.broadcast %cst_110 : f32 to vector<8x1xf32>
    %320 = arith.addf %316, %319 : vector<8x1xf32>
    %321 = math.rsqrt %320 : vector<8x1xf32>
    %322 = vector.broadcast %321 : vector<8x1xf32> to vector<8x64xf32>
    %323 = arith.mulf %318, %322 : vector<8x64xf32>
    %324 = vector.broadcast %304 : vector<1x64xf32> to vector<8x64xf32>
    %325 = arith.mulf %323, %324 : vector<8x64xf32>
    %326 = vector.broadcast %305 : vector<1x64xf32> to vector<8x64xf32>
    %327 = arith.addf %325, %326 : vector<8x64xf32>
    %c18 = arith.constant 18 : index
    %c0_111 = arith.constant 0 : index
    %328 = vector.load %arg3[%c18, %c0_111] : memref<21x256xf32, #tpu.memory_space<vmem>>, vector<2x64xf32>
    %cst_112 = arith.constant dense<0.000000e+00> : vector<8x2xf32>
    %329 = tpu.matmul %327, %328, %cst_112 {dimension_numbers = #tpu.dot_dimension_numbers<[1], [1], [0], [0], [0, 0, 1, 0], [], []>} : vector<8x64xf32>, vector<2x64xf32>, vector<8x2xf32> -> vector<8x2xf32>
    %c20 = arith.constant 20 : index
    %c0_113 = arith.constant 0 : index
    %330 = vector.load %arg3[%c20, %c0_113] : memref<21x256xf32, #tpu.memory_space<vmem>>, vector<1x2xf32>
    %331 = vector.broadcast %330 : vector<1x2xf32> to vector<8x2xf32>
    %332 = arith.addf %329, %331 : vector<8x2xf32>
    %c0_114 = arith.constant 0 : index
    %c0_115 = arith.constant 0 : index
    %333 = vector.load %arg4[%c0_114, %c0_115] : memref<8x2xf32, #tpu.memory_space<vmem>>, vector<8x2xf32>
    tpu.vector_store %arg4[%c0_114, %c0_115], %332 {strides = array<i32>} : memref<8x2xf32, #tpu.memory_space<vmem>>, vector<8x2xf32>,
    return
  }
}

</mosaic_0001>

<bundles_post_ra>
// kernel: tpu_custom_call.1
= control target key start
LH: loop header
LB: loop body
LE: loop exit
PB: predicated region body
PF: predicated region fallthrough
CT: control target
= control target key end

     0   :  { %v2826_v0 = vmov 0   ;;  %vm90_vm0 = vcmask 523264   ;;  %v2827_v16 = vmov 0.0   ;;  %v40_v17 = vlaneseq  ;;  %s2829_s12 = smov 48   ;;  %s2830_s13 = smov 64   ;;  %s3375_s0 = inlined_call_operand.vmem [shape: f32[8,1], index: 0, kind: input, shape index: {}]   ;;  %s3376_s1 = inlined_call_operand.vmem [shape: bf16[2,64,512], index: 1, kind: input, shape index: {}]   ;;  %s3377_s3 = inlined_call_operand.vmem [shape: f32[21,256], index: 3, kind: input, shape index: {}]   ;;  %s3378_s2 = inlined_call_operand.vmem [shape: bf16[2,256,64], index: 2, kind: input, shape index: {}]   ;;  %s3379_s4 = inlined_call_operand.vmem [shape: f32[8,2], index: 4, kind: output, shape index: {}]  }
   0x1   :  { %2697 = vset.pattern.permute.xlu0 %v2826_v0  ;;  %v18_v1 = vld [vmem:[%s3375_s0] sm:$0xff]  ;;  %126 = vmatprep.mubr.bf16.mxu0 %v2826_v0  ;;  %vm2828_vm1 = vmmov 0   ;;  %vm211_vm2 = vcmask 1043456   ;;  %s2831_s14 = smov 112   ;;  %vm148_vm3 = vcmask 130048   ;;  %vm195_vm4 = vcmask 64512  }
   0x2   :  { %23 = vperm.xlu0 %2697, %v18_v1   ;;  %v2698_v2 = vld [vmem:[%s3376_s1 + $0x4] ss:$16 sps:$4 sm:$0xff]   ;;  %v2700_v3 = vld [vmem:[%s3376_s1] ss:$16 sps:$4 sm:$0xff]   ;;  %2544 = vmatprep.subr.bf16.mxu1 %v2827_v16  ;;  %v41_v18 = vshrl.u32 %v40_v17, 7  ;;  %s2832_s15 = smov 32  }
   0x3   :  { %v2701_v4 = vld [vmem:[%s3376_s1 + $0x24] ss:$16 sps:$4 sm:$0xff]   ;;  %94 = vmatprep.subr.bf16.mxu0 %v2698_v2  ;;  %v2703_v5 = vld [vmem:[%s3376_s1 + $0x20] ss:$16 sps:$4 sm:$0xff]   ;;  %2546 = vmatprep.mubr.msk.bf16.mxu1 %vm2828_vm1, %v2827_v16  ;;  %s2833_s16 = smov 96   ;;  %s2834_s21 = smov 16  }
   0x4   :  { %95 = vmatpush1.bf16.msra.mxu0 %v2700_v3  ;;  %v2704_v6 = vld [vmem:[%s3376_s1 + $0x44] ss:$16 sps:$4 sm:$0xff]   ;;  %v2706_v7 = vld [vmem:[%s3376_s1 + $0x40] ss:$16 sps:$4 sm:$0xff]   ;;  %v2903_v19 = vsub.s32 0, %v41_v18  ;;  %v2908_v21 = vsub.s32 1, %v41_v18 }
   0x5   :  { %96 = vmatprep.subr.bf16.mxu0 %v2701_v4  ;;  %v2707_v8 = vld [vmem:[%s3376_s1 + $0x64] ss:$16 sps:$4 sm:$0xff]   ;;  %v2709_v9 = vld [vmem:[%s3376_s1 + $0x60] ss:$16 sps:$4 sm:$0xff]   ;;  %s2835_s22 = smov 80   ;;  %vm2276_vm5 = vcmask 15360  }
   0x6   :  { %v20_v10 = vld [vmem:[%s3377_s3] ss:$0 sm:$0xff]  ;;  %v19_v11 = vld [vmem:[%s3377_s3 + $0x1] ss:$0 sm:$0xff]  ;;  %v2710_v58 = vld [vmem:[%s3376_s1 + $0x24] ss:$16 sps:$4 sm:$0xff]  }
   0x7   :  { %v2282_v20 = vld [vmem:[%s3377_s3 + $0x2] ss:$8 sm:$0x3] }
   0x8   :  { %97 = vmatpush1.bf16.msra.mxu0 %v2703_v5  ;;  %v43_v22 = vrot.slane %v2282_v20, %v2903_v19  ;;  %v47_v23 = vrot.slane %v2282_v20, %v2908_v21 }
   0x9   :  { %98 = vmatprep.subr.bf16.mxu0 %v2704_v6 }
   0xc   :  { %99 = vmatpush1.bf16.msra.mxu0 %v2706_v7 }
   0xd   :  { %100 = vmatprep.subr.bf16.mxu0 %v2707_v8 }
  0x10   :  { %101 = vmatpush1.bf16.msra.mxu0 %v2709_v9 }
  0x11   :  { %2538 = vmatprep.subr.bf16.mxu0 %v2827_v16 }
  0x81   :  { %v24_v12 = vpop.permute.xlu0 %23 }
  0x82   :  { %v26_v13 = vmul.f32 %v24_v12, %v20_v10 }
  0x84   :  { %v2896_v14 = vadd.f32 %v26_v13, %v19_v11 }
  0x86   :  { %v28_v15 = vpack.c.bf16 %v2896_v14, %v2896_v14 }
  0x88   :  { %2291 = vmatmul.mubr.msk.bf16.vlgmr.msra.gmra.mrb[0].mxu0 %vm90_vm0, %v28_v15 }
  0x89   :  { %2540 = vmatprep.mubr.msk.bf16.mxu0 %vm2828_vm1, %v2827_v16 }
 0x15b   :  { %v128_v24 = vpop.f32.mrb[0].mxu0 }
 0x15c   :  { %v129_v25 = vadd.f32 %v128_v24, %v43_v22  ;;  %v130_v26 = vpop.f32.mrb[1].mxu0 }
 0x15d   :  { %v131_v27 = vadd.f32 %v130_v26, %v47_v23  ;;  %v132_v28 = vpop.f32.mrb[2].mxu0 }
 0x15e   :  { %v2916_v29 = vpack.c.bf16 %v129_v25, %v129_v25  ;;  %v133_v30 = vpop.f32.mrb[3].mxu0 }
 0x15f   :  { %v2918_v31 = vpack.c.bf16 %v131_v27, %v131_v27 }
 0x160   :  { %258 = vrot.lane.b32.xlu1 %v2916_v29, %s2829_s12  ;;  %146 = vrot.lane.b32.xlu0 %v2916_v29, %s2830_s13 }
 0x161   :  { %v213_v32 = vsel %vm211_vm2, %v2918_v31, 0 }
 0x162   :  { %2545 = vmatpush3.bf16.msra.mxu1 %v213_v32 }
 0x163   :  { %2556 = vmatprep.subr.bf16.mxu1 %v2827_v16 }
 0x164   :  { %256 = vrot.lane.b32.xlu1 %v2916_v29, %s2831_s14 }
 0x1d2   :  { %v147_v33 = vpop.permute.xlu0 %146  ;;  %v259_v35 = vpop.permute.xlu1 %258 }
 0x1d3   :  { %v153_v34 = vsel %vm148_vm3, %v147_v33, 0  ;;  %v264_v36 = vsel %vm148_vm3, %v259_v35, 0 }
 0x1d4   :  { %2539 = vmatpush3.bf16.xpose.msra.mxu0 %v153_v34  ;;  %v2711_v34 = vld [vmem:[%s3376_s1 + $0x4] ss:$16 sps:$4 sm:$0xff]  }
 0x1d5   :  { %2550 = vmatprep.subr.bf16.mxu0 %v2827_v16 }
 0x1d6   :  { %v257_v37 = vpop.permute.xlu1 %256 }
 0x1db   :  { %2541 = vmatmul.mubr.msk.bf16.vlgmr.msra.gmra.mrb[4].mxu0 %vm148_vm3, %v2916_v29 }
 0x1dc   :  { %2551 = vmatpush3.bf16.xpose.msra.mxu0 %v264_v36  ;;  %2552 = vmatprep.mubr.msk.bf16.mxu0 %vm2828_vm1, %v2827_v16 }
 0x1dd   :  { %2562 = vmatprep.subr.bf16.mxu0 %v2827_v16 }
 0x1e3   :  { %2553 = vmatmul.mubr.msk.bf16.vlgmr.msra.gmra.mrb[8].mxu0 %vm148_vm3, %v257_v37 }
 0x1e4   :  { %2564 = vmatprep.mubr.msk.bf16.mxu0 %vm2828_vm1, %v2827_v16 }
 0x2ae   :  { %v189_v38 = vpop.f32.mrb[4].mxu0 }
 0x2af   :  { %v2542_v39 = vpop.f32.mrb[5].mxu0  ;;  %v196_v40 = vsel %vm195_vm4, %v189_v38, -inf }
 0x2b0   :  { %197 = vmax.xlane.f32.xlu0 %v196_v40  ;;  %v192_v41 = vpop.f32.mrb[6].mxu0 }
 0x2b1   :  { %v2543_v42 = vpop.f32.mrb[7].mxu0 }
 0x2b6   :  { %v300_v43 = vpop.f32.mrb[8].mxu0 }
 0x2b7   :  { %v2554_v44 = vpop.f32.mrb[9].mxu0  ;;  %v306_v45 = vsel %vm195_vm4, %v300_v43, -inf }
 0x2b8   :  { %307 = vmax.xlane.f32.xlu1 %v306_v45  ;;  %v303_v46 = vpop.f32.mrb[10].mxu0 }
 0x2b9   :  { %v2555_v47 = vpop.f32.mrb[11].mxu0 }
 0x2c9   :  { %319 = vrot.lane.b32.xlu1 %v2918_v31, %s2831_s14 }
 0x2cd   :  { %472 = vrot.lane.b32.xlu1 %v2916_v29, %s2832_s15 }
 0x2d1   :  { %470 = vrot.lane.b32.xlu1 %v2916_v29, %s2833_s16 }
 0x33d   :  { %v198_v48 = vpop.xlane.xlu0 %197 }
 0x33e   :  { %v199_v49 = vsub.f32 %v189_v38, %v198_v48 }
 0x340   :  { %v200_v50 = vmul.f32 1.442695, %v199_v49 }
 0x342   :  { %2786 = vpow2.f32 %v200_v50 }
 0x345   :  { %v308_v51 = vpop.xlane.xlu1 %307 }
 0x346   :  { %v309_v52 = vsub.f32 %v300_v43, %v308_v51 }
 0x348   :  { %v310_v53 = vmul.f32 1.442695, %v309_v52 }
 0x349   :  { %v320_v63 = vpop.permute.xlu1 %319 }
 0x34a   :  { %2788 = vpow2.f32 %v310_v53  ;;  %v325_v2 = vsel %vm211_vm2, %v320_v63, 0 }
 0x34c   :  { %v2787_v54 = vpop.eup %2786 }
 0x34d   :  { %v202_v55 = vsel %vm195_vm4, %v2787_v54, 0.0  ;;  %v473_v11 = vpop.permute.xlu1 %472 }
 0x34e   :  { %203 = vadd.xlane.f32.xlu0 %v202_v55  ;;  %v478_v18 = vsel %vm148_vm3, %v473_v11, 0 }
 0x351   :  { %v471_v22 = vpop.permute.xlu1 %470 }
 0x354   :  { %v2789_v56 = vpop.eup %2788 }
 0x355   :  { %v312_v57 = vsel %vm195_vm4, %v2789_v56, 0.0 }
 0x356   :  { %313 = vadd.xlane.f32.xlu0 %v312_v57 }
 0x36c   :  { %373 = vrot.lane.b32.xlu0 %v2710_v58, %s2830_s13 }
 0x3db   :  { %v204_v59 = vpop.xlane.xlu0 %203 }
 0x3dc   :  { %2790 = vrcp.f32 %v204_v59 }
 0x3e3   :  { %v314_v60 = vpop.xlane.xlu0 %313 }
 0x3e4   :  { %2792 = vrcp.f32 %v314_v60 }
 0x3e6   :  { %v2791_v61 = vpop.eup %2790 }
 0x3e7   :  { %v206_v62 = vmul.f32 %v2791_v61, %v2787_v54  ;;  %v374_v6 = vpop.permute.xlu0 %373 }
 0x3e8   :  { %2563 = vmatpush3.bf16.msra.mxu0 %v374_v6 }
 0x3e9   :  { %v207_v1 = vpack.c.bf16 %v206_v62, %v206_v62  ;;  %2574 = vmatprep.subr.bf16.mxu0 %v2827_v16 }
 0x3eb   :  { %2547 = vmatmul.mubr.msk.bf16.vlgmr.msra.gmra.mrb[0].mxu1 %vm195_vm4, %v207_v1  ;;  %v2712_v1 = vld [vmem:[%s3376_s1 + $0x44] ss:$16 sps:$4 sm:$0xff]  }
 0x3ec   :  { %2557 = vmatpush3.bf16.msra.mxu1 %v325_v2  ;;  %2558 = vmatprep.mubr.msk.bf16.mxu1 %vm2828_vm1, %v2827_v16 }
 0x3ed   :  { %2568 = vmatprep.subr.bf16.mxu1 %v2827_v16 }
 0x3ee   :  { %v2793_v3 = vpop.eup %2792 }
 0x3ef   :  { %v316_v4 = vmul.f32 %v2793_v3, %v2789_v56 }
 0x3f1   :  { %v317_v5 = vpack.c.bf16 %v316_v4, %v316_v4 }
 0x3f3   :  { %2559 = vmatmul.mubr.msk.bf16.vlgmr.msra.gmra.mrb[4].mxu1 %vm195_vm4, %v317_v5 }
 0x3f4   :  { %2570 = vmatprep.mubr.msk.bf16.mxu1 %vm2828_vm1, %v2827_v16 }
 0x4be   :  { %v249_v7 = vpop.f32.mrb[0].mxu1 }
 0x4bf   :  { %v2548_v8 = vpop.f32.mrb[1].mxu1  ;;  %v255_v39 = vpack.c.bf16 %v249_v7, %v249_v7 }
 0x4c0   :  { %v252_v9 = vpop.f32.mrb[2].mxu1 }
 0x4c1   :  { %v2549_v10 = vpop.f32.mrb[3].mxu1  ;;  %v2713_v9 = vld [vmem:[%s3376_s1 + $0x64] ss:$16 sps:$4 sm:$0xff]  }
 0x4c6   :  { %v361_v12 = vpop.f32.mrb[4].mxu1 }
 0x4c7   :  { %v367_v13 = vpack.c.bf16 %v361_v12, %v361_v12  ;;  %v2560_v15 = vpop.f32.mrb[5].mxu1 }
 0x4c8   :  { %v364_v17 = vpop.f32.mrb[6].mxu1 }
 0x4c9   :  { %v2561_v20 = vpop.f32.mrb[7].mxu1  ;;  %2565 = vmatmul.mubr.msk.bf16.vlgmr.msra.gmra.mrb[12].mxu0 %vm148_vm3, %v367_v13 }
 0x4ca   :  { %2575 = vmatpush3.bf16.xpose.msra.mxu0 %v478_v18  ;;  %2576 = vmatprep.mubr.msk.bf16.mxu0 %vm2828_vm1, %v2827_v16 }
 0x4cb   :  { %2586 = vmatprep.subr.bf16.mxu0 %v2827_v16 }
 0x4d1   :  { %2577 = vmatmul.mubr.msk.bf16.vlgmr.msra.gmra.mrb[16].mxu0 %vm148_vm3, %v471_v22 }
 0x4d2   :  { %2588 = vmatprep.mubr.msk.bf16.mxu0 %vm2828_vm1, %v2827_v16 }
 0x59c   :  { %v413_v23 = vpop.f32.mrb[12].mxu0 }
 0x59d   :  { %v2566_v24 = vpop.f32.mrb[13].mxu0 }
 0x59e   :  { %v416_v25 = vpop.f32.mrb[14].mxu0 }
 0x59f   :  { %v2567_v26 = vpop.f32.mrb[15].mxu0 }
 0x5a4   :  { %v514_v27 = vpop.f32.mrb[16].mxu0 }
 0x5a5   :  { %v2578_v28 = vpop.f32.mrb[17].mxu0  ;;  %v520_v30 = vsel %vm195_vm4, %v514_v27, -inf }
 0x5a6   :  { %521 = vmax.xlane.f32.xlu0 %v520_v30  ;;  %v517_v32 = vpop.f32.mrb[18].mxu0 }
 0x5a7   :  { %v2579_v33 = vpop.f32.mrb[19].mxu0 }
 0x5a8   :  { %v796_v33 = vld [vmem:[%s3377_s3 + $0x3] ss:$0 sm:$0xff] }
 0x5bc   :  { %424 = vrot.lane.b32.xlu0 %v2711_v34, %s2830_s13 }
 0x5c0   :  { %635 = vrot.lane.b32.xlu0 %v2916_v29, %s2834_s21 }
 0x633   :  { %v522_v35 = vpop.xlane.xlu0 %521 }
 0x634   :  { %v523_v36 = vsub.f32 %v514_v27, %v522_v35 }
 0x636   :  { %v524_v37 = vmul.f32 1.442695, %v523_v36 }
 0x637   :  { %v425_v38 = vpop.permute.xlu0 %424 }
 0x638   :  { %2794 = vpow2.f32 %v524_v37  ;;  %2569 = vmatpush3.bf16.msra.mxu1 %v425_v38 }
 0x639   :  { %2580 = vmatprep.subr.bf16.mxu1 %v2827_v16 }
 0x63b   :  { %2571 = vmatmul.mubr.msk.bf16.vlgmr.msra.gmra.mrb[8].mxu1 %vm148_vm3, %v255_v39  ;;  %v636_v47 = vpop.permute.xlu0 %635 }
 0x63c   :  { %2582 = vmatprep.mubr.msk.bf16.mxu1 %vm2828_vm1, %v2827_v16  ;;  %v641_v49 = vsel %vm148_vm3, %v636_v47, 0  ;;  %v2714_v47 = vld [vmem:[%s3376_s1 + $0x8] ss:$16 sps:$4 sm:$0xff]  }
 0x642   :  { %v2795_v40 = vpop.eup %2794 }
 0x643   :  { %v526_v41 = vsel %vm195_vm4, %v2795_v40, 0.0 }
 0x644   :  { %527 = vadd.xlane.f32.xlu1 %v526_v41 }
 0x655   :  { %532 = vrot.lane.b32.xlu1 %v2918_v31, %s2833_s16 }
 0x659   :  { %633 = vrot.lane.b32.xlu1 %v2916_v29, %s2835_s22 }
 0x6d1   :  { %v528_v42 = vpop.xlane.xlu1 %527 }
 0x6d2   :  { %2796 = vrcp.f32 %v528_v42 }
 0x6d5   :  { %v533_v43 = vpop.permute.xlu1 %532 }
 0x6d6   :  { %v538_v44 = vsel %vm211_vm2, %v533_v43, 0 }
 0x6d7   :  { %2581 = vmatpush3.bf16.msra.mxu1 %v538_v44 }
 0x6d8   :  { %2592 = vmatprep.subr.bf16.mxu1 %v2827_v16 }
 0x6d9   :  { %v634_v29 = vpop.permute.xlu1 %633 }
 0x6dc   :  { %v2797_v45 = vpop.eup %2796 }
 0x6dd   :  { %v530_v46 = vmul.f32 %v2797_v45, %v2795_v40 }
 0x6df   :  { %v531_v48 = vpack.c.bf16 %v530_v46, %v530_v46  ;;  %v2716_v46 = vld [vmem:[%s3376_s1 + $0xc] ss:$16 sps:$4 sm:$0xff]  }
 0x6e1   :  { %2583 = vmatmul.mubr.msk.bf16.vlgmr.msra.gmra.mrb[12].mxu1 %vm195_vm4, %v531_v48  ;;  %v2717_v48 = vld [vmem:[%s3376_s1 + $0x28] ss:$16 sps:$4 sm:$0xff]  }
 0x6e2   :  { %2593 = vmatpush3.bf16.xpose.msra.mxu1 %v641_v49  ;;  %2594 = vmatprep.mubr.msk.bf16.mxu1 %vm2828_vm1, %v2827_v16  ;;  %v2722_v49 = vld [vmem:[%s3376_s1 + $0x4c] ss:$16 sps:$4 sm:$0xff]  }
 0x6e3   :  { %2604 = vmatprep.subr.bf16.mxu1 %v2827_v16 }
 0x6e9   :  { %2595 = vmatmul.mubr.msk.bf16.vlgmr.msra.gmra.mrb[16].mxu1 %vm148_vm3, %v634_v29  ;;  %v2720_v29 = vld [vmem:[%s3376_s1 + $0x48] ss:$16 sps:$4 sm:$0xff]  }
 0x6ea   :  { %2606 = vmatprep.mubr.msk.bf16.mxu1 %vm2828_vm1, %v2827_v16 }
 0x70e   :  { %v464_v50 = vpop.f32.mrb[8].mxu1 }
 0x70f   :  { %v465_v51 = vadd.f32 %v464_v50, %v413_v23  ;;  %v2572_v52 = vpop.f32.mrb[9].mxu1  ;;  %v2723_v50 = vld [vmem:[%s3376_s1 + $0x68] ss:$16 sps:$4 sm:$0xff]  }
 0x710   :  { %v467_v53 = vpop.f32.mrb[10].mxu1  ;;  %v2726_v52 = vld [vmem:[%s3378_s2 + $0x40] sm:$0xff]  }
 0x711   :  { %v2573_v54 = vpop.f32.mrb[11].mxu1  ;;  %v2727_v53 = vld [vmem:[%s3378_s2] sm:$0xff]  }
 0x712   :  { %v2728_v54 = vld [vmem:[%s3378_s2 + $0x48] sm:$0xff]  }
 0x7b4   :  { %v574_v55 = vpop.f32.mrb[12].mxu1 }
 0x7b5   :  { %v2584_v56 = vpop.f32.mrb[13].mxu1  ;;  %v580_v6 = vpack.c.bf16 %v574_v55, %v574_v55  ;;  %v2729_v55 = vld [vmem:[%s3378_s2 + $0x8] sm:$0xff]  }
 0x7b6   :  { %v577_v57 = vpop.f32.mrb[14].mxu1  ;;  %v2730_v56 = vld [vmem:[%s3378_s2 + $0x50] sm:$0xff]  }
 0x7b7   :  { %v2585_v58 = vpop.f32.mrb[15].mxu1  ;;  %v2731_v57 = vld [vmem:[%s3378_s2 + $0x10] sm:$0xff]  }
 0x7b8   :  { %v2732_v58 = vld [vmem:[%s3378_s2 + $0x58] sm:$0xff]  }
 0x7bc   :  { %v677_v59 = vpop.f32.mrb[16].mxu1 }
 0x7bd   :  { %v2596_v60 = vpop.f32.mrb[17].mxu1  ;;  %v683_v61 = vsel %vm195_vm4, %v677_v59, -inf }
 0x7be   :  { %684 = vmax.xlane.f32.xlu0 %v683_v61  ;;  %v680_v62 = vpop.f32.mrb[18].mxu1  ;;  %v2734_v60 = vld [vmem:[%s3378_s2 + $0x60] sm:$0xff]  }
 0x7bf   :  { %v2597_v63 = vpop.f32.mrb[19].mxu1  ;;  %v2735_v61 = vld [vmem:[%s3378_s2 + $0x20] sm:$0xff]   ;;  %v2736_v62 = vld [vmem:[%s3378_s2 + $0x68] sm:$0xff]  }
 0x7c0   :  { %v2737_v63 = vld [vmem:[%s3378_s2 + $0x28] sm:$0xff]  }
 0x7d4   :  { %586 = vrot.lane.b32.xlu0 %v2712_v1, %s2830_s13 }
 0x7d8   :  { %749 = vrot.lane.b32.xlu0 %v2713_v9, %s2830_s13 }
 0x84b   :  { %v685_v2 = vpop.xlane.xlu0 %684 }
 0x84c   :  { %v686_v3 = vsub.f32 %v677_v59, %v685_v2  ;;  %v2733_v59 = vld [vmem:[%s3378_s2 + $0x18] sm:$0xff]  }
 0x84e   :  { %v687_v4 = vmul.f32 1.442695, %v686_v3 }
 0x84f   :  { %v587_v5 = vpop.permute.xlu0 %586 }
 0x850   :  { %2798 = vpow2.f32 %v687_v4  ;;  %2587 = vmatpush3.bf16.msra.mxu0 %v587_v5  ;;  %v799_v5 = vld [vmem:[%s3377_s3 + $0x4] ss:$0 sm:$0xff] }
 0x851   :  { %2598 = vmatprep.subr.bf16.mxu0 %v2827_v16 }
 0x853   :  { %2589 = vmatmul.mubr.msk.bf16.vlgmr.msra.gmra.mrb[20].mxu0 %vm148_vm3, %v580_v6 }
 0x854   :  { %2600 = vmatprep.mubr.msk.bf16.mxu0 %vm2828_vm1, %v2827_v16 }
 0x85a   :  { %v2799_v7 = vpop.eup %2798 }
 0x85b   :  { %v689_v8 = vsel %vm195_vm4, %v2799_v7, 0.0 }
 0x85c   :  { %690 = vadd.xlane.f32.xlu1 %v689_v8 }
 0x86d   :  { %695 = vrot.lane.b32.xlu1 %v2918_v31, %s2835_s22  ;;  %v750_v31 = vpop.permute.xlu0 %749 }
 0x86e   :  { %2605 = vmatpush3.bf16.msra.mxu1 %v750_v31 }
 0x86f   :  { %2468 = vmatprep.subr.bf16.mxu1 %v2726_v52  ;;  %v2753_v52 = vld [vmem:[%s3376_s1 + $0xe4] ss:$16 sps:$4 sm:$0xff]  }
 0x8e9   :  { %v691_v10 = vpop.xlane.xlu1 %690 }
 0x8ea   :  { %2800 = vrcp.f32 %v691_v10 }
 0x8ed   :  { %v696_v11 = vpop.permute.xlu1 %695 }
 0x8ee   :  { %v701_v12 = vsel %vm211_vm2, %v696_v11, 0  ;;  %v2738_v11 = vld [vmem:[%s3378_s2 + $0x70] sm:$0xff]  }
 0x8ef   :  { %2599 = vmatpush3.bf16.msra.mxu0 %v701_v12  ;;  %v2739_v12 = vld [vmem:[%s3378_s2 + $0x30] sm:$0xff]  }
 0x8f0   :  { %882 = vmatprep.subr.bf16.mxu0 %v2716_v46 }
 0x8f4   :  { %v2801_v13 = vpop.eup %2800 }
 0x8f5   :  { %v693_v15 = vmul.f32 %v2801_v13, %v2799_v7  ;;  %v800_v7 = vld [vmem:[%s3377_s3 + $0x5] ss:$0 sm:$0xff]  ;;  %v2740_v13 = vld [vmem:[%s3378_s2 + $0x78] sm:$0xff]  }
 0x8f7   :  { %v694_v17 = vpack.c.bf16 %v693_v15, %v693_v15  ;;  %v2741_v15 = vld [vmem:[%s3378_s2 + $0x38] sm:$0xff]  }
 0x8f9   :  { %2601 = vmatmul.mubr.msk.bf16.vlgmr.msra.gmra.mrb[24].mxu0 %vm195_vm4, %v694_v17  ;;  %v2308_v17 = vld [vmem:[%s3377_s3 + $0x6] ss:$8 sm:$0x3] }
 0x8fa   :  { %914 = vmatprep.mubr.bf16.mxu0 %v2826_v0  ;;  %883 = vmatpush1.bf16.msra.mxu0 %v2714_v47  ;;  %v832_v31 = vrot.slane %v2308_v17, %v2903_v19  ;;  %v2744_v47 = vld [vmem:[%s3376_s1 + $0x84] ss:$16 sps:$4 sm:$0xff]  }
 0x926   :  { %v626_v18 = vpop.f32.mrb[20].mxu0 }
 0x927   :  { %v632_v20 = vadd.f32 %v626_v18, %v465_v51  ;;  %v2590_v22 = vpop.f32.mrb[21].mxu0  ;;  %v2725_v51 = vld [vmem:[%s3376_s1 + $0x6c] ss:$16 sps:$4 sm:$0xff]   ;;  %v836_v18 = vrot.slane %v2308_v17, %v2908_v21 }
 0x928   :  { %v629_v23 = vpop.f32.mrb[22].mxu0 }
 0x929   :  { %v2591_v24 = vpop.f32.mrb[23].mxu0 }
 0x9cc   :  { %v737_v25 = vpop.f32.mrb[24].mxu0 }
 0x9cd   :  { %v743_v26 = vpack.c.bf16 %v737_v25, %v737_v25  ;;  %v2602_v27 = vpop.f32.mrb[25].mxu0 }
 0x9ce   :  { %v740_v28 = vpop.f32.mrb[26].mxu0 }
 0x9cf   :  { %v2603_v30 = vpop.f32.mrb[27].mxu0  ;;  %2607 = vmatmul.mubr.msk.bf16.vlgmr.msra.gmra.mrb[20].mxu1 %vm148_vm3, %v743_v26 }
 0x9d0   :  { %2469 = vmatpush3.bf16.msra.mxu1 %v2727_v53 }
 0x9d1   :  { %2470 = vmatprep.subr.bf16.mxu1 %v2728_v54 }
 0x9d4   :  { %2471 = vmatpush3.bf16.msra.mxu1 %v2729_v55 }
 0x9d5   :  { %2472 = vmatprep.subr.bf16.mxu1 %v2730_v56 }
 0x9d8   :  { %2473 = vmatpush3.bf16.msra.mxu1 %v2731_v57  ;;  %v1097_v57 = vld [vmem:[%s3377_s3 + $0x10] ss:$0 sm:$0xff] }
 0x9d9   :  { %2474 = vmatprep.subr.bf16.mxu1 %v2732_v58 }
 0x9dc   :  { %2475 = vmatpush3.bf16.msra.mxu1 %v2733_v59  ;;  %v1098_v59 = vld [vmem:[%s3377_s3 + $0x11] ss:$0 sm:$0xff] }
 0x9dd   :  { %2476 = vmatprep.subr.bf16.mxu1 %v2734_v60 }
 0x9e0   :  { %2477 = vmatpush3.bf16.msra.mxu1 %v2735_v61 }
 0x9e1   :  { %2478 = vmatprep.subr.bf16.mxu1 %v2736_v62 }
 0x9e4   :  { %2479 = vmatpush3.bf16.msra.mxu1 %v2737_v63  ;;  %v2342_v63 = vld [vmem:[%s3377_s3 + $0x12] ss:$8 sm:$0x3] }
 0x9e5   :  { %2480 = vmatprep.subr.bf16.mxu1 %v2738_v11 }
 0x9e8   :  { %2481 = vmatpush3.bf16.msra.mxu1 %v2739_v12 }
 0x9e9   :  { %2482 = vmatprep.subr.bf16.mxu1 %v2740_v13 }
 0x9ec   :  { %2483 = vmatpush3.bf16.msra.mxu1 %v2741_v15 }
 0x9ed   :  { %2616 = vmatprep.subr.bf16.mxu1 %v2827_v16 }
 0xaa2   :  { %v789_v32 = vpop.f32.mrb[20].mxu1 }
 0xaa3   :  { %v795_v34 = vadd.f32 %v789_v32, %v632_v20  ;;  %v2608_v35 = vpop.f32.mrb[21].mxu1 }
 0xaa4   :  { %v792_v36 = vpop.f32.mrb[22].mxu1 }
 0xaa5   :  { %v797_v37 = vadd.f32 %v796_v33, %v795_v34  ;;  %v2609_v38 = vpop.f32.mrb[23].mxu1  ;;  %v959_v34 = vld [vmem:[%s3377_s3 + $0x7] ss:$0 sm:$0xff] }
 0xaa7   :  { %v798_v39 = vadd.f32 %v797_v37, %v2896_v14  ;;  %v2719_v14 = vld [vmem:[%s3376_s1 + $0x2c] ss:$16 sps:$4 sm:$0xff]  }
 0xaa8   :  { %884 = vmatprep.subr.bf16.mxu0 %v2719_v14  ;;  %v2742_v14 = vld [vmem:[%s3376_s1 + $0x80] ss:$16 sps:$4 sm:$0xff]  }
 0xaa9   :  { %v801_v40 = vsel %vm90_vm0, %v798_v39, 0.0  ;;  %885 = vmatpush1.bf16.msra.mxu0 %v2717_v48  ;;  %v2747_v48 = vld [vmem:[%s3376_s1 + $0xa4] ss:$16 sps:$4 sm:$0xff]  }
 0xaaa   :  { %802 = vadd.xlane.f32.xlu1 %v801_v40  ;;  %886 = vmatprep.subr.bf16.mxu0 %v2722_v49  ;;  %v2745_v49 = vld [vmem:[%s3376_s1 + $0xa0] ss:$16 sps:$4 sm:$0xff]  }
 0xaad   :  { %887 = vmatpush1.bf16.msra.mxu0 %v2720_v29  ;;  %v2750_v29 = vld [vmem:[%s3376_s1 + $0xc4] ss:$16 sps:$4 sm:$0xff]  }
 0xaae   :  { %888 = vmatprep.subr.bf16.mxu0 %v2725_v51  ;;  %v2751_v51 = vld [vmem:[%s3376_s1 + $0xe0] ss:$16 sps:$4 sm:$0xff]  }
 0xab1   :  { %889 = vmatpush1.bf16.msra.mxu0 %v2723_v50  ;;  %v2748_v50 = vld [vmem:[%s3376_s1 + $0xc0] ss:$16 sps:$4 sm:$0xff]  }
 0xab2   :  { %1180 = vmatprep.subr.bf16.mxu0 %v2744_v47 }
 0xb37   :  { %v803_v41 = vpop.xlane.xlu1 %802 }
 0xb38   :  { %v805_v42 = vmul.f32 0.015625, %v803_v41 }
 0xb3a   :  { %v806_v43 = vsub.f32 %v798_v39, %v805_v42 }
 0xb3c   :  { %v807_v44 = vmul.f32 %v806_v43, %v806_v43 }
 0xb3e   :  { %v808_v45 = vsel %vm90_vm0, %v807_v44, 0.0 }
 0xb3f   :  { %809 = vadd.xlane.f32.xlu0 %v808_v45 }
 0xbcc   :  { %v810_v1 = vpop.xlane.xlu0 %809 }
 0xbcd   :  { %v811_v2 = vmul.f32 0.015625, %v810_v1  ;;  %v1130_v1 = vrot.slane %v2342_v63, %v2903_v19 }
 0xbcf   :  { %v812_v3 = vadd.f32 1e-05, %v811_v2  ;;  %v1134_v2 = vrot.slane %v2342_v63, %v2908_v21 }
 0xbd1   :  { %2802 = vrsqrt.f32 %v812_v3 }
 0xbdb   :  { %v2803_v4 = vpop.eup %2802 }
 0xbdc   :  { %v814_v6 = vmul.f32 %v2803_v4, %v806_v43 }
 0xbde   :  { %v815_v8 = vmul.f32 %v814_v6, %v799_v5 }
 0xbe0   :  { %v816_v9 = vadd.f32 %v815_v8, %v800_v7 }
 0xbe2   :  { %v817_v10 = vpack.c.bf16 %v816_v9, %v816_v9 }
 0xbe4   :  { %2317 = vmatmul.mubr.msk.bf16.vlgmr.msra.gmra.mrb[28].mxu0 %vm90_vm0, %v817_v10 }
 0xbe5   :  { %1212 = vmatprep.mubr.bf16.mxu0 %v2826_v0  ;;  %1181 = vmatpush1.bf16.msra.mxu0 %v2742_v14 }
 0xbe6   :  { %1182 = vmatprep.subr.bf16.mxu0 %v2747_v48 }
 0xbe9   :  { %1183 = vmatpush1.bf16.msra.mxu0 %v2745_v49 }
 0xbea   :  { %1184 = vmatprep.subr.bf16.mxu0 %v2750_v29 }
 0xbed   :  { %1185 = vmatpush1.bf16.msra.mxu0 %v2748_v50 }
 0xbee   :  { %1186 = vmatprep.subr.bf16.mxu0 %v2753_v52 }
 0xbf1   :  { %1187 = vmatpush1.bf16.msra.mxu0 %v2751_v51 }
 0xbf2   :  { %2610 = vmatprep.subr.bf16.mxu0 %v2827_v16 }
 0xcb7   :  { %v916_v20 = vpop.f32.mrb[28].mxu0 }
 0xcb8   :  { %v917_v22 = vadd.f32 %v916_v20, %v832_v31  ;;  %v918_v23 = vpop.f32.mrb[29].mxu0 }
 0xcb9   :  { %v919_v24 = vadd.f32 %v918_v23, %v836_v18  ;;  %v920_v25 = vpop.f32.mrb[30].mxu0 }
 0xcba   :  { %v923_v26 = vmax.f32 %v917_v22, 0.0  ;;  %v921_v27 = vpop.f32.mrb[31].mxu0 }
 0xcbb   :  { %v924_v28 = vmax.f32 %v919_v24, 0.0 }
 0xcbc   :  { %v925_v32 = vpack.c.bf16 %v923_v26, %v923_v26 }
 0xcbd   :  { %v926_v30 = vpack.c.bf16 %v924_v28, %v924_v28 }
 0xcbf   :  { %1088 = vmatprep.mubr.bf16.mxu1 %v926_v30 }
 0xcc0   :  { %1089 = vmatmul.mubr.bf16.vlgmr.msra.gmra.mrb[24].mxu1 %v925_v32 }
 0xcc1   :  { %2618 = vmatprep.mubr.msk.bf16.mxu1 %vm2828_vm1, %v2827_v16 }
 0xd93   :  { %v2484_v33 = vpop.f32.mrb[24].mxu1 }
 0xd94   :  { %v2485_v35 = vpop.f32.mrb[25].mxu1 }
 0xd95   :  { %v2486_v36 = vadd.f32 %v2485_v35, %v2484_v33  ;;  %v2487_v37 = vpop.f32.mrb[26].mxu1 }
 0xd96   :  { %v2488_v38 = vpop.f32.mrb[27].mxu1 }
 0xd97   :  { %v1091_v39 = vadd.f32 %v2486_v36, %v959_v34 }
 0xd99   :  { %v1096_v40 = vadd.f32 %v1091_v39, %v816_v9 }
 0xd9b   :  { %v1099_v41 = vsel %vm90_vm0, %v1096_v40, 0.0 }
 0xd9c   :  { %1100 = vadd.xlane.f32.xlu0 %v1099_v41 }
 0xe29   :  { %v1101_v42 = vpop.xlane.xlu0 %1100 }
 0xe2a   :  { %v1102_v43 = vmul.f32 0.015625, %v1101_v42  ;;  %v2754_v42 = vld [vmem:[%s3376_s1 + $0xa4] ss:$16 sps:$4 sm:$0xff]  }
 0xe2c   :  { %v1103_v44 = vsub.f32 %v1096_v40, %v1102_v43 }
 0xe2e   :  { %v1104_v45 = vmul.f32 %v1103_v44, %v1103_v44 }
 0xe30   :  { %v1105_v46 = vsel %vm90_vm0, %v1104_v45, 0.0 }
 0xe31   :  { %1106 = vadd.xlane.f32.xlu1 %v1105_v46 }
 0xebe   :  { %v1107_v53 = vpop.xlane.xlu1 %1106 }
 0xebf   :  { %v1108_v54 = vmul.f32 0.015625, %v1107_v53 }
 0xec1   :  { %v1109_v55 = vadd.f32 1e-05, %v1108_v54 }
 0xec3   :  { %2804 = vrsqrt.f32 %v1109_v55 }
 0xecd   :  { %v2805_v56 = vpop.eup %2804 }
 0xece   :  { %v1111_v58 = vmul.f32 %v2805_v56, %v1103_v44 }
 0xed0   :  { %v1112_v60 = vmul.f32 %v1111_v58, %v1097_v57 }
 0xed2   :  { %v3147_v61 = vadd.f32 %v1112_v60, %v1098_v59 }
 0xed4   :  { %v1114_v62 = vpack.c.bf16 %v3147_v61, %v3147_v61 }
 0xed6   :  { %2351 = vmatmul.mubr.msk.bf16.vlgmr.msra.gmra.mrb[32].mxu0 %vm90_vm0, %v1114_v62 }
 0xed7   :  { %2612 = vmatprep.mubr.msk.bf16.mxu0 %vm2828_vm1, %v2827_v16 }
 0xfa9   :  { %v1214_v3 = vpop.f32.mrb[32].mxu0 }
 0xfaa   :  { %v1215_v4 = vadd.f32 %v1214_v3, %v1130_v1  ;;  %v1216_v5 = vpop.f32.mrb[33].mxu0 }
 0xfab   :  { %v1217_v6 = vadd.f32 %v1216_v5, %v1134_v2  ;;  %v1218_v7 = vpop.f32.mrb[34].mxu0 }
 0xfac   :  { %v3159_v8 = vpack.c.bf16 %v1215_v4, %v1215_v4  ;;  %v1219_v9 = vpop.f32.mrb[35].mxu0 }
 0xfad   :  { %v3161_v10 = vpack.c.bf16 %v1217_v6, %v1217_v6 }
 0xfae   :  { %1341 = vrot.lane.b32.xlu1 %v3159_v8, %s2829_s12  ;;  %1232 = vrot.lane.b32.xlu0 %v3159_v8, %s2830_s13 }
 0xfaf   :  { %v1296_v11 = vsel %vm211_vm2, %v3161_v10, 0 }
 0xfb0   :  { %2617 = vmatpush3.bf16.msra.mxu1 %v1296_v11 }
 0xfb1   :  { %2628 = vmatprep.subr.bf16.mxu1 %v2827_v16 }
 0xfb2   :  { %1339 = vrot.lane.b32.xlu1 %v3159_v8, %s2831_s14 }
0x1020   :  { %v1233_v12 = vpop.permute.xlu0 %1232  ;;  %v1342_v15 = vpop.permute.xlu1 %1341 }
0x1021   :  { %v1238_v13 = vsel %vm148_vm3, %v1233_v12, 0  ;;  %v1347_v17 = vsel %vm148_vm3, %v1342_v15, 0 }
0x1022   :  { %2611 = vmatpush3.bf16.xpose.msra.mxu0 %v1238_v13  ;;  %v2755_v13 = vld [vmem:[%s3376_s1 + $0x84] ss:$16 sps:$4 sm:$0xff]  }
0x1023   :  { %2622 = vmatprep.subr.bf16.mxu0 %v2827_v16 }
0x1024   :  { %v1340_v31 = vpop.permute.xlu1 %1339 }
0x1029   :  { %2613 = vmatmul.mubr.msk.bf16.vlgmr.msra.gmra.mrb[36].mxu0 %vm148_vm3, %v3159_v8 }
0x102a   :  { %2623 = vmatpush3.bf16.xpose.msra.mxu0 %v1347_v17  ;;  %2624 = vmatprep.mubr.msk.bf16.mxu0 %vm2828_vm1, %v2827_v16 }
0x102b   :  { %2634 = vmatprep.subr.bf16.mxu0 %v2827_v16 }
0x1031   :  { %2625 = vmatmul.mubr.msk.bf16.vlgmr.msra.gmra.mrb[40].mxu0 %vm148_vm3, %v1340_v31 }
0x1032   :  { %2636 = vmatprep.mubr.msk.bf16.mxu0 %vm2828_vm1, %v2827_v16 }
0x10fc   :  { %v1274_v18 = vpop.f32.mrb[36].mxu0 }
0x10fd   :  { %v2614_v20 = vpop.f32.mrb[37].mxu0  ;;  %v1280_v22 = vsel %vm195_vm4, %v1274_v18, -inf }
0x10fe   :  { %1281 = vmax.xlane.f32.xlu0 %v1280_v22  ;;  %v1277_v23 = vpop.f32.mrb[38].mxu0 }
0x10ff   :  { %v2615_v24 = vpop.f32.mrb[39].mxu0 }
0x1104   :  { %v1383_v25 = vpop.f32.mrb[40].mxu0 }
0x1105   :  { %v2626_v26 = vpop.f32.mrb[41].mxu0  ;;  %v1389_v27 = vsel %vm195_vm4, %v1383_v25, -inf }
0x1106   :  { %1390 = vmax.xlane.f32.xlu1 %v1389_v27  ;;  %v1386_v28 = vpop.f32.mrb[42].mxu0 }
0x1107   :  { %v2627_v30 = vpop.f32.mrb[43].mxu0 }
0x1117   :  { %1402 = vrot.lane.b32.xlu1 %v3161_v10, %s2831_s14 }
0x111b   :  { %1555 = vrot.lane.b32.xlu1 %v3159_v8, %s2832_s15 }
0x111f   :  { %1553 = vrot.lane.b32.xlu1 %v3159_v8, %s2833_s16 }
0x118b   :  { %v1282_v32 = vpop.xlane.xlu0 %1281 }
0x118c   :  { %v1283_v33 = vsub.f32 %v1274_v18, %v1282_v32 }
0x118e   :  { %v1284_v34 = vmul.f32 1.442695, %v1283_v33 }
0x1190   :  { %2806 = vpow2.f32 %v1284_v34 }
0x1193   :  { %v1391_v35 = vpop.xlane.xlu1 %1390 }
0x1194   :  { %v1392_v36 = vsub.f32 %v1383_v25, %v1391_v35 }
0x1196   :  { %v1393_v37 = vmul.f32 1.442695, %v1392_v36 }
0x1197   :  { %v1403_v47 = vpop.permute.xlu1 %1402 }
0x1198   :  { %2808 = vpow2.f32 %v1393_v37  ;;  %v1408_v48 = vsel %vm211_vm2, %v1403_v47, 0 }
0x119a   :  { %v2807_v38 = vpop.eup %2806 }
0x119b   :  { %v1286_v39 = vsel %vm195_vm4, %v2807_v38, 0.0  ;;  %v1556_v56 = vpop.permute.xlu1 %1555 }
0x119c   :  { %1287 = vadd.xlane.f32.xlu0 %v1286_v39  ;;  %v1561_v62 = vsel %vm148_vm3, %v1556_v56, 0 }
0x119f   :  { %v1554_v1 = vpop.permute.xlu1 %1553 }
0x11a2   :  { %v2809_v40 = vpop.eup %2808 }
0x11a3   :  { %v1395_v41 = vsel %vm195_vm4, %v2809_v40, 0.0 }
0x11a4   :  { %1396 = vadd.xlane.f32.xlu0 %v1395_v41 }
0x11ba   :  { %1456 = vrot.lane.b32.xlu0 %v2754_v42, %s2830_s13 }
0x1229   :  { %v1288_v43 = vpop.xlane.xlu0 %1287 }
0x122a   :  { %2810 = vrcp.f32 %v1288_v43 }
0x1231   :  { %v1397_v44 = vpop.xlane.xlu0 %1396 }
0x1232   :  { %2812 = vrcp.f32 %v1397_v44 }
0x1234   :  { %v2811_v45 = vpop.eup %2810 }
0x1235   :  { %v1290_v46 = vmul.f32 %v2811_v45, %v2807_v38  ;;  %v1457_v51 = vpop.permute.xlu0 %1456 }
0x1236   :  { %2635 = vmatpush3.bf16.msra.mxu0 %v1457_v51 }
0x1237   :  { %v1291_v14 = vpack.c.bf16 %v1290_v46, %v1290_v46  ;;  %2646 = vmatprep.subr.bf16.mxu0 %v2827_v16 }
0x1239   :  { %2619 = vmatmul.mubr.msk.bf16.vlgmr.msra.gmra.mrb[28].mxu1 %vm195_vm4, %v1291_v14  ;;  %v2756_v14 = vld [vmem:[%s3376_s1 + $0xc4] ss:$16 sps:$4 sm:$0xff]  }
0x123a   :  { %2629 = vmatpush3.bf16.msra.mxu1 %v1408_v48  ;;  %2630 = vmatprep.mubr.msk.bf16.mxu1 %vm2828_vm1, %v2827_v16 }
0x123b   :  { %2640 = vmatprep.subr.bf16.mxu1 %v2827_v16 }
0x123c   :  { %v2813_v49 = vpop.eup %2812 }
0x123d   :  { %v1399_v29 = vmul.f32 %v2813_v49, %v2809_v40 }
0x123f   :  { %v1400_v50 = vpack.c.bf16 %v1399_v29, %v1399_v29 }
0x1241   :  { %2631 = vmatmul.mubr.msk.bf16.vlgmr.msra.gmra.mrb[32].mxu1 %vm195_vm4, %v1400_v50 }
0x1242   :  { %2642 = vmatprep.mubr.msk.bf16.mxu1 %vm2828_vm1, %v2827_v16 }
0x130c   :  { %v1332_v52 = vpop.f32.mrb[28].mxu1 }
0x130d   :  { %v2620_v53 = vpop.f32.mrb[29].mxu1  ;;  %v1338_v20 = vpack.c.bf16 %v1332_v52, %v1332_v52 }
0x130e   :  { %v1335_v54 = vpop.f32.mrb[30].mxu1 }
0x130f   :  { %v2621_v55 = vpop.f32.mrb[31].mxu1  ;;  %v2757_v54 = vld [vmem:[%s3376_s1 + $0xe4] ss:$16 sps:$4 sm:$0xff]  }
0x1314   :  { %v1444_v57 = vpop.f32.mrb[32].mxu1 }
0x1315   :  { %v1450_v58 = vpack.c.bf16 %v1444_v57, %v1444_v57  ;;  %v2632_v59 = vpop.f32.mrb[33].mxu1 }
0x1316   :  { %v1447_v60 = vpop.f32.mrb[34].mxu1 }
0x1317   :  { %v2633_v63 = vpop.f32.mrb[35].mxu1  ;;  %2637 = vmatmul.mubr.msk.bf16.vlgmr.msra.gmra.mrb[44].mxu0 %vm148_vm3, %v1450_v58 }
0x1318   :  { %2647 = vmatpush3.bf16.xpose.msra.mxu0 %v1561_v62  ;;  %2648 = vmatprep.mubr.msk.bf16.mxu0 %vm2828_vm1, %v2827_v16 }
0x1319   :  { %2658 = vmatprep.subr.bf16.mxu0 %v2827_v16 }
0x131f   :  { %2649 = vmatmul.mubr.msk.bf16.vlgmr.msra.gmra.mrb[48].mxu0 %vm148_vm3, %v1554_v1 }
0x1320   :  { %2660 = vmatprep.mubr.msk.bf16.mxu0 %vm2828_vm1, %v2827_v16 }
0x13ea   :  { %v1496_v2 = vpop.f32.mrb[44].mxu0 }
0x13eb   :  { %v2638_v3 = vpop.f32.mrb[45].mxu0 }
0x13ec   :  { %v1499_v4 = vpop.f32.mrb[46].mxu0 }
0x13ed   :  { %v2639_v5 = vpop.f32.mrb[47].mxu0 }
0x13f2   :  { %v1597_v6 = vpop.f32.mrb[48].mxu0 }
0x13f3   :  { %v2650_v7 = vpop.f32.mrb[49].mxu0  ;;  %v1603_v9 = vsel %vm195_vm4, %v1597_v6, -inf }
0x13f4   :  { %1604 = vmax.xlane.f32.xlu0 %v1603_v9  ;;  %v1600_v11 = vpop.f32.mrb[50].mxu0 }
0x13f5   :  { %v2651_v12 = vpop.f32.mrb[51].mxu0 }
0x13f6   :  { %v1879_v12 = vld [vmem:[%s3377_s3 + $0x13] ss:$0 sm:$0xff] }
0x140a   :  { %1507 = vrot.lane.b32.xlu0 %v2755_v13, %s2830_s13 }
0x140e   :  { %1718 = vrot.lane.b32.xlu0 %v3159_v8, %s2834_s21 }
0x1481   :  { %v1605_v15 = vpop.xlane.xlu0 %1604 }
0x1482   :  { %v1606_v17 = vsub.f32 %v1597_v6, %v1605_v15 }
0x1484   :  { %v1607_v31 = vmul.f32 1.442695, %v1606_v17 }
0x1485   :  { %v1508_v18 = vpop.permute.xlu0 %1507 }
0x1486   :  { %2814 = vpow2.f32 %v1607_v31  ;;  %2641 = vmatpush3.bf16.msra.mxu1 %v1508_v18 }
0x1487   :  { %2652 = vmatprep.subr.bf16.mxu1 %v2827_v16 }
0x1489   :  { %2643 = vmatmul.mubr.msk.bf16.vlgmr.msra.gmra.mrb[36].mxu1 %vm148_vm3, %v1338_v20  ;;  %v1719_v30 = vpop.permute.xlu0 %1718 }
0x148a   :  { %2654 = vmatprep.mubr.msk.bf16.mxu1 %vm2828_vm1, %v2827_v16  ;;  %v1724_v33 = vsel %vm148_vm3, %v1719_v30, 0  ;;  %v2761_v30 = vld [vmem:[%s3376_s1 + $0xa8] ss:$16 sps:$4 sm:$0xff]  }
0x1490   :  { %v2815_v22 = vpop.eup %2814 }
0x1491   :  { %v1609_v23 = vsel %vm195_vm4, %v2815_v22, 0.0 }
0x1492   :  { %1610 = vadd.xlane.f32.xlu1 %v1609_v23 }
0x14a3   :  { %1615 = vrot.lane.b32.xlu1 %v3161_v10, %s2833_s16 }
0x14a7   :  { %1716 = vrot.lane.b32.xlu1 %v3159_v8, %s2835_s22 }
0x151f   :  { %v1611_v24 = vpop.xlane.xlu1 %1610 }
0x1520   :  { %2816 = vrcp.f32 %v1611_v24 }
0x1523   :  { %v1616_v25 = vpop.permute.xlu1 %1615 }
0x1524   :  { %v1621_v26 = vsel %vm211_vm2, %v1616_v25, 0 }
0x1525   :  { %2653 = vmatpush3.bf16.msra.mxu1 %v1621_v26 }
0x1526   :  { %2664 = vmatprep.subr.bf16.mxu1 %v2827_v16 }
0x1527   :  { %v1717_v8 = vpop.permute.xlu1 %1716 }
0x152a   :  { %v2817_v27 = vpop.eup %2816 }
0x152b   :  { %v1613_v28 = vmul.f32 %v2817_v27, %v2815_v22  ;;  %v2760_v27 = vld [vmem:[%s3376_s1 + $0x8c] ss:$16 sps:$4 sm:$0xff]  }
0x152d   :  { %v1614_v32 = vpack.c.bf16 %v1613_v28, %v1613_v28  ;;  %v2758_v28 = vld [vmem:[%s3376_s1 + $0x88] ss:$16 sps:$4 sm:$0xff]  }
0x152f   :  { %2655 = vmatmul.mubr.msk.bf16.vlgmr.msra.gmra.mrb[40].mxu1 %vm195_vm4, %v1614_v32  ;;  %v2766_v32 = vld [vmem:[%s3376_s1 + $0xcc] ss:$16 sps:$4 sm:$0xff]  }
0x1530   :  { %2665 = vmatpush3.bf16.xpose.msra.mxu1 %v1724_v33  ;;  %2666 = vmatprep.mubr.msk.bf16.mxu1 %vm2828_vm1, %v2827_v16  ;;  %v2764_v33 = vld [vmem:[%s3376_s1 + $0xc8] ss:$16 sps:$4 sm:$0xff]  }
0x1531   :  { %2676 = vmatprep.subr.bf16.mxu1 %v2827_v16 }
0x1537   :  { %2667 = vmatmul.mubr.msk.bf16.vlgmr.msra.gmra.mrb[44].mxu1 %vm148_vm3, %v1717_v8  ;;  %v2767_v8 = vld [vmem:[%s3376_s1 + $0xe8] ss:$16 sps:$4 sm:$0xff]  }
0x1538   :  { %2678 = vmatprep.mubr.msk.bf16.mxu1 %vm2828_vm1, %v2827_v16 }
0x155c   :  { %v1547_v34 = vpop.f32.mrb[36].mxu1 }
0x155d   :  { %v1548_v35 = vadd.f32 %v1547_v34, %v1496_v2  ;;  %v2644_v36 = vpop.f32.mrb[37].mxu1  ;;  %v2769_v34 = vld [vmem:[%s3376_s1 + $0xec] ss:$16 sps:$4 sm:$0xff]  }
0x155e   :  { %v1550_v37 = vpop.f32.mrb[38].mxu1  ;;  %v2771_v36 = vld [vmem:[%s3378_s2 + $0x80] sm:$0xff]  }
0x155f   :  { %v2645_v38 = vpop.f32.mrb[39].mxu1  ;;  %v2772_v37 = vld [vmem:[%s3378_s2 + $0xc8] sm:$0xff]  }
0x1560   :  { %v2773_v38 = vld [vmem:[%s3378_s2 + $0x88] sm:$0xff]  }
0x1602   :  { %v1657_v39 = vpop.f32.mrb[40].mxu1 }
0x1603   :  { %v2656_v40 = vpop.f32.mrb[41].mxu1  ;;  %v1663_v51 = vpack.c.bf16 %v1657_v39, %v1657_v39  ;;  %v2774_v39 = vld [vmem:[%s3378_s2 + $0xd0] sm:$0xff]  }
0x1604   :  { %v1660_v41 = vpop.f32.mrb[42].mxu1  ;;  %v2775_v40 = vld [vmem:[%s3378_s2 + $0x90] sm:$0xff]  }
0x1605   :  { %v2657_v42 = vpop.f32.mrb[43].mxu1  ;;  %v2776_v41 = vld [vmem:[%s3378_s2 + $0xd8] sm:$0xff]  }
0x1606   :  { %v2777_v42 = vld [vmem:[%s3378_s2 + $0x98] sm:$0xff]  }
0x160a   :  { %v1760_v43 = vpop.f32.mrb[44].mxu1 }
0x160b   :  { %v2668_v44 = vpop.f32.mrb[45].mxu1  ;;  %v1766_v45 = vsel %vm195_vm4, %v1760_v43, -inf }
0x160c   :  { %1767 = vmax.xlane.f32.xlu0 %v1766_v45  ;;  %v1763_v46 = vpop.f32.mrb[46].mxu1  ;;  %v2779_v44 = vld [vmem:[%s3378_s2 + $0xa0] sm:$0xff]   ;;  %v2780_v45 = vld [vmem:[%s3378_s2 + $0xe8] sm:$0xff]  }
0x160d   :  { %v2669_v47 = vpop.f32.mrb[47].mxu1  ;;  %v2781_v46 = vld [vmem:[%s3378_s2 + $0xa8] sm:$0xff]  }
0x1622   :  { %1669 = vrot.lane.b32.xlu0 %v2756_v14, %s2830_s13 }
0x1626   :  { %1832 = vrot.lane.b32.xlu0 %v2757_v54, %s2830_s13 }
0x1699   :  { %v1768_v48 = vpop.xlane.xlu0 %1767 }
0x169a   :  { %v1769_v49 = vsub.f32 %v1760_v43, %v1768_v48  ;;  %v2778_v43 = vld [vmem:[%s3378_s2 + $0xe0] sm:$0xff]  }
0x169c   :  { %v1770_v29 = vmul.f32 1.442695, %v1769_v49 }
0x169d   :  { %v1670_v50 = vpop.permute.xlu0 %1669 }
0x169e   :  { %2818 = vpow2.f32 %v1770_v29  ;;  %2659 = vmatpush3.bf16.msra.mxu0 %v1670_v50  ;;  %v1882_v29 = vld [vmem:[%s3377_s3 + $0x14] ss:$0 sm:$0xff] }
0x169f   :  { %2670 = vmatprep.subr.bf16.mxu0 %v2827_v16 }
0x16a1   :  { %2661 = vmatmul.mubr.msk.bf16.vlgmr.msra.gmra.mrb[52].mxu0 %vm148_vm3, %v1663_v51  ;;  %v1883_v51 = vld [vmem:[%s3377_s3 + $0x15] ss:$0 sm:$0xff] }
0x16a2   :  { %2672 = vmatprep.mubr.msk.bf16.mxu0 %vm2828_vm1, %v2827_v16 }
0x16a8   :  { %v2819_v52 = vpop.eup %2818 }
0x16a9   :  { %v1772_v53 = vsel %vm195_vm4, %v2819_v52, 0.0 }
0x16aa   :  { %1773 = vadd.xlane.f32.xlu1 %v1772_v53 }
0x16bb   :  { %1778 = vrot.lane.b32.xlu1 %v3161_v10, %s2835_s22  ;;  %v1833_v10 = vpop.permute.xlu0 %1832 }
0x16bc   :  { %2677 = vmatpush3.bf16.msra.mxu1 %v1833_v10 }
0x1737   :  { %v1774_v55 = vpop.xlane.xlu1 %1773 }
0x1738   :  { %2820 = vrcp.f32 %v1774_v55  ;;  %v2782_v55 = vld [vmem:[%s3378_s2 + $0xf0] sm:$0xff]  }
0x173b   :  { %v1779_v56 = vpop.permute.xlu1 %1778 }
0x173c   :  { %v1784_v57 = vsel %vm211_vm2, %v1779_v56, 0  ;;  %v2783_v56 = vld [vmem:[%s3378_s2 + $0xb0] sm:$0xff]  }
0x173d   :  { %2671 = vmatpush3.bf16.msra.mxu0 %v1784_v57  ;;  %v2784_v57 = vld [vmem:[%s3378_s2 + $0xf8] sm:$0xff]  }
0x173e   :  { %1964 = vmatprep.subr.bf16.mxu0 %v2760_v27 }
0x1742   :  { %v2821_v58 = vpop.eup %2820 }
0x1743   :  { %v1776_v59 = vmul.f32 %v2821_v58, %v2819_v52  ;;  %v2785_v58 = vld [vmem:[%s3378_s2 + $0xb8] sm:$0xff]  }
0x1745   :  { %v1777_v60 = vpack.c.bf16 %v1776_v59, %v1776_v59  ;;  %v2384_v59 = vld [vmem:[%s3377_s3 + $0x16] ss:$8 sm:$0x3] }
0x1746   :  { %v1918_v10 = vrot.slane %v2384_v59, %v2908_v21 }
0x1747   :  { %2673 = vmatmul.mubr.msk.bf16.vlgmr.msra.gmra.mrb[56].mxu0 %vm195_vm4, %v1777_v60  ;;  %v1914_v60 = vrot.slane %v2384_v59, %v2903_v19  ;;  %v2042_v19 = vld [vmem:[%s3377_s3 + $0x17] ss:$0 sm:$0xff] }
0x1748   :  { %1996 = vmatprep.mubr.bf16.mxu0 %v2826_v0  ;;  %1965 = vmatpush1.bf16.msra.mxu0 %v2758_v28 }
0x1774   :  { %v1709_v62 = vpop.f32.mrb[52].mxu0 }
0x1775   :  { %v1715_v63 = vadd.f32 %v1709_v62, %v1548_v35  ;;  %v2662_v1 = vpop.f32.mrb[53].mxu0  ;;  %v2770_v35 = vld [vmem:[%s3378_s2 + $0xc0] sm:$0xff]  }
0x1776   :  { %v1712_v2 = vpop.f32.mrb[54].mxu0  ;;  %2514 = vmatprep.subr.bf16.mxu1 %v2770_v35  ;;  %v2198_v35 = vld [vmem:[%s3377_s3 + $0x24] ss:$0 sm:$0xff] }
0x1777   :  { %v2663_v3 = vpop.f32.mrb[55].mxu0 }
0x181a   :  { %v1820_v4 = vpop.f32.mrb[56].mxu0 }
0x181b   :  { %v1826_v5 = vpack.c.bf16 %v1820_v4, %v1820_v4  ;;  %v2674_v6 = vpop.f32.mrb[57].mxu0 }
0x181c   :  { %v1823_v7 = vpop.f32.mrb[58].mxu0 }
0x181d   :  { %v2675_v9 = vpop.f32.mrb[59].mxu0  ;;  %2679 = vmatmul.mubr.msk.bf16.vlgmr.msra.gmra.mrb[48].mxu1 %vm148_vm3, %v1826_v5 }
0x181e   :  { %2515 = vmatpush3.bf16.msra.mxu1 %v2771_v36 }
0x181f   :  { %2516 = vmatprep.subr.bf16.mxu1 %v2772_v37 }
0x1822   :  { %2517 = vmatpush3.bf16.msra.mxu1 %v2773_v38 }
0x1823   :  { %2518 = vmatprep.subr.bf16.mxu1 %v2774_v39 }
0x1826   :  { %2519 = vmatpush3.bf16.msra.mxu1 %v2775_v40 }
0x1827   :  { %2520 = vmatprep.subr.bf16.mxu1 %v2776_v41 }
0x182a   :  { %2521 = vmatpush3.bf16.msra.mxu1 %v2777_v42 }
0x182b   :  { %2522 = vmatprep.subr.bf16.mxu1 %v2778_v43 }
0x182e   :  { %2523 = vmatpush3.bf16.msra.mxu1 %v2779_v44 }
0x182f   :  { %2524 = vmatprep.subr.bf16.mxu1 %v2780_v45 }
0x1832   :  { %2525 = vmatpush3.bf16.msra.mxu1 %v2781_v46 }
0x1833   :  { %2526 = vmatprep.subr.bf16.mxu1 %v2782_v55 }
0x1836   :  { %2527 = vmatpush3.bf16.msra.mxu1 %v2783_v56 }
0x1837   :  { %2528 = vmatprep.subr.bf16.mxu1 %v2784_v57 }
0x183a   :  { %2529 = vmatpush3.bf16.msra.mxu1 %v2785_v58 }
0x183b   :  { %2682 = vmatprep.subr.mxu1 %v2827_v16 }
0x18f0   :  { %v1872_v11 = vpop.f32.mrb[48].mxu1 }
0x18f1   :  { %v1878_v0 = vadd.f32 %v1872_v11, %v1715_v63  ;;  %v2680_v13 = vpop.f32.mrb[49].mxu1 }
0x18f2   :  { %v1875_v15 = vpop.f32.mrb[50].mxu1 }
0x18f3   :  { %v1880_v17 = vadd.f32 %v1879_v12, %v1878_v0  ;;  %v2681_v31 = vpop.f32.mrb[51].mxu1 }
0x18f5   :  { %v1881_v18 = vadd.f32 %v1880_v17, %v3147_v61  ;;  %v2763_v61 = vld [vmem:[%s3376_s1 + $0xac] ss:$16 sps:$4 sm:$0xff]  }
0x18f6   :  { %1966 = vmatprep.subr.bf16.mxu0 %v2763_v61 }
0x18f7   :  { %v1884_v20 = vsel %vm90_vm0, %v1881_v18, 0.0  ;;  %1967 = vmatpush1.bf16.msra.mxu0 %v2761_v30  ;;  %v2180_v30 = vld [vmem:[%s3377_s3 + $0x20] ss:$0 sm:$0xff] }
0x18f8   :  { %1885 = vadd.xlane.f32.xlu1 %v1884_v20  ;;  %1968 = vmatprep.subr.bf16.mxu0 %v2766_v32 }
0x18fb   :  { %1969 = vmatpush1.bf16.msra.mxu0 %v2764_v33  ;;  %v2181_v33 = vld [vmem:[%s3377_s3 + $0x21] ss:$0 sm:$0xff] }
0x18fc   :  { %1970 = vmatprep.subr.bf16.mxu0 %v2769_v34 }
0x18ff   :  { %1971 = vmatpush1.bf16.msra.mxu0 %v2767_v8 }
0x1985   :  { %v1886_v22 = vpop.xlane.xlu1 %1885 }
0x1986   :  { %v1887_v23 = vmul.f32 0.015625, %v1886_v22 }
0x1988   :  { %v1888_v24 = vsub.f32 %v1881_v18, %v1887_v23 }
0x198a   :  { %v1889_v25 = vmul.f32 %v1888_v24, %v1888_v24 }
0x198c   :  { %v1890_v26 = vsel %vm90_vm0, %v1889_v25, 0.0 }
0x198d   :  { %1891 = vadd.xlane.f32.xlu0 %v1890_v26 }
0x1a1a   :  { %v1892_v47 = vpop.xlane.xlu0 %1891 }
0x1a1b   :  { %v1893_v14 = vmul.f32 0.015625, %v1892_v47 }
0x1a1d   :  { %v1894_v48 = vadd.f32 1e-05, %v1893_v14 }
0x1a1f   :  { %2822 = vrsqrt.f32 %v1894_v48 }
0x1a29   :  { %v2823_v49 = vpop.eup %2822 }
0x1a2a   :  { %v1896_v50 = vmul.f32 %v2823_v49, %v1888_v24  ;;  %v2197_v24 = vld [vmem:[%s3377_s3 + $0x20] sm:$0xc] }
0x1a2b   :  { %v2200_v25 = vrot.slane %v2197_v24, 2 }
0x1a2c   :  { %v1897_v52 = vmul.f32 %v1896_v50, %v1882_v29 }
0x1a2e   :  { %v1898_v53 = vadd.f32 %v1897_v52, %v1883_v51 }
0x1a30   :  { %v1899_v54 = vpack.c.bf16 %v1898_v53, %v1898_v53 }
0x1a32   :  { %2393 = vmatmul.mubr.msk.bf16.vlgmr.msra.gmra.mrb[60].mxu0 %vm90_vm0, %v1899_v54 }
0x1b05   :  { %v1998_v62 = vpop.f32.mrb[60].mxu0 }
0x1b06   :  { %v1999_v63 = vadd.f32 %v1998_v62, %v1914_v60  ;;  %v2000_v1 = vpop.f32.mrb[61].mxu0 }
0x1b07   :  { %v2001_v2 = vadd.f32 %v2000_v1, %v1918_v10  ;;  %v2002_v3 = vpop.f32.mrb[62].mxu0 }
0x1b08   :  { %v2005_v4 = vmax.f32 %v1999_v63, 0.0  ;;  %v2003_v5 = vpop.f32.mrb[63].mxu0 }
0x1b09   :  { %v2006_v6 = vmax.f32 %v2001_v2, 0.0 }
0x1b0a   :  { %v2007_v9 = vpack.c.bf16 %v2005_v4, %v2005_v4 }
0x1b0b   :  { %v2008_v7 = vpack.c.bf16 %v2006_v6, %v2006_v6 }
0x1b0d   :  { %2171 = vmatprep.mubr.bf16.mxu1 %v2008_v7 }
0x1b0e   :  { %2172 = vmatmul.mubr.bf16.vlgmr.msra.gmra.mrb[52].mxu1 %v2007_v9 }
0x1b0f   :  { %2684 = vmatprep.mubr.msk.f32.mxu1 %vm2828_vm1, %v2827_v16  ;;  %2683 = vmatpush3.xpose.msk.msra.mxu1 %vm90_vm0, %v2200_v25 }
0x1be1   :  { %v2530_v11 = vpop.f32.mrb[52].mxu1 }
0x1be2   :  { %v2531_v21 = vpop.f32.mrb[53].mxu1 }
0x1be3   :  { %v2532_v12 = vadd.f32 %v2531_v21, %v2530_v11  ;;  %v2533_v0 = vpop.f32.mrb[54].mxu1 }
0x1be4   :  { %v2534_v13 = vpop.f32.mrb[55].mxu1 }
0x1be5   :  { %v2174_v15 = vadd.f32 %v2532_v12, %v2042_v19 }
0x1be7   :  { %v2179_v17 = vadd.f32 %v2174_v15, %v1898_v53 }
0x1be9   :  { %v2182_v31 = vsel %vm90_vm0, %v2179_v17, 0.0 }
0x1bea   :  { %2183 = vadd.xlane.f32.xlu0 %v2182_v31 }
0x1c77   :  { %v2184_v18 = vpop.xlane.xlu0 %2183 }
0x1c78   :  { %v2185_v20 = vmul.f32 0.015625, %v2184_v18 }
0x1c7a   :  { %v2186_v22 = vsub.f32 %v2179_v17, %v2185_v20 }
0x1c7c   :  { %v2187_v23 = vmul.f32 %v2186_v22, %v2186_v22 }
0x1c7e   :  { %v2188_v16 = vsel %vm90_vm0, %v2187_v23, 0.0 }
0x1c7f   :  { %2189 = vadd.xlane.f32.xlu1 %v2188_v16 }
0x1d0c   :  { %v2190_v26 = vpop.xlane.xlu1 %2189 }
0x1d0d   :  { %v2191_v27 = vmul.f32 0.015625, %v2190_v26 }
0x1d0f   :  { %v2192_v28 = vadd.f32 1e-05, %v2191_v27 }
0x1d11   :  { %2824 = vrsqrt.f32 %v2192_v28 }
0x1d1b   :  { %v2825_v61 = vpop.eup %2824 }
0x1d1c   :  { %v2194_v32 = vmul.f32 %v2825_v61, %v2186_v22 }
0x1d1e   :  { %v2195_v8 = vmul.f32 %v2194_v32, %v2180_v30 }
0x1d20   :  { %v2196_v34 = vadd.f32 %v2195_v8, %v2181_v33 }
0x1d22   :  { %2685 = vmatmul.mubr.msk.f32.vlgmr.msra.gmra.mrb[56].mxu1 %vm90_vm0, %v2196_v34 }
0x1df5   :  { %v2272_v36 = vpop.f32.mrb[56].mxu1 }
0x1df6   :  { %v2273_v37 = vadd.f32 %v2272_v36, %v2198_v35  ;;  %v2686_v38 = vpop.f32.mrb[57].mxu1 }
0x1df8   :  { %2277 = vst.msk [vmem:[%s3379_s4] sm:$0xff] %vm2276_vm5, %v2273_v37 }

</bundles_post_ra>
